<compile_context>
chip_gen: v7x
topology: tpu7x:2x2x1
jax: 0.10.0
libtpu: 0.0.40
codegen_flags: <defaults>
</compile_context>

<pallas_src>
import functools

import jax
import jax.numpy as jnp
from jax.experimental import pallas as pl
from jax.experimental.pallas import tpu as pltpu


def _sigmoid(v):
    # sigmoid(v) == 0.5 * tanh(v/2) + 0.5 ; tanh runs on the EUP (otherwise idle here),
    # avoiding the multi-op VALU Newton divide of 1/(1+exp(-v)), with no accuracy loss.
    return 0.5 * jnp.tanh(0.5 * v) + 0.5


def multires_kernel(x_cur_ref, x_prev_ref, h0_ref, h1_ref, wmix_ref, bmix_ref,
                    gamma_ref, beta_ref, o_ref, stage_ref,
                    *, depth, filter_size, pad, pad_zero, halo, tile, eps):
    # x_cur_ref : (1, C, TILE)  current L-tile of one batch element
    # x_prev_ref: (1, C, HALO)  last HALO columns of the previous tile (ignored at t==0)
    # stage_ref : (C, PAD + HALO + TILE) f32 scratch, layout [zero pad | halo | tile]
    C = x_cur_ref.shape[1]
    K = filter_size
    W = halo + tile                       # working window (halo columns are recomputed)
    t = pl.program_id(1)

    # --- stage the level-0 input window --------------------------------------------
    # Zero only the pad columns that are ever read (largest shift = (K-1)*2^(depth-1)).
    # Unconditional on purpose: on megacore each core has its own scratch and its first
    # step is not necessarily t == 0.
    stage_ref[:, pad - pad_zero:pad] = jnp.zeros((C, pad_zero), jnp.float32)

    @pl.when(t == 0)                      # halo before the sequence start is zeros
    def _():
        stage_ref[:, pad:pad + halo] = jnp.zeros((C, halo), jnp.float32)

    @pl.when(t > 0)                       # otherwise: tail of the previous tile
    def _():
        stage_ref[:, pad:pad + halo] = x_prev_ref[0].astype(jnp.float32)

    stage_ref[:, pad + halo:pad + W] = x_cur_ref[0].astype(jnp.float32)

    # --- per-tap filter slices, hoisted out of the depth loop -----------------------
    h0 = h0_ref[...].astype(jnp.float32)
    h1 = h1_ref[...].astype(jnp.float32)
    h0_taps = [h0[:, k:k + 1] for k in range(K)]
    h1_taps = [h1[:, k:k + 1] for k in range(K)]

    def conv_taps(taps, dilation, level_in, c0, width):
        # Output columns [c0, c0+width) of the causal depthwise dilated conv whose
        # input is staged at stage_ref[:, pad:pad+W] (and live as `level_in`).
        # Tap K-1 has shift 0 -> peeled, taken straight from the live value.
        acc = taps[K - 1] * (level_in if width == W else level_in[:, c0:c0 + width])
        for k in range(K - 2, -1, -1):
            shift = (K - 1 - k) * dilation
            start = pad + c0 - shift
            acc = acc + taps[k] * stage_ref[:, start:start + width]
        return acc

    a = stage_ref[:, pad:pad + W]         # live level input window (C, W)
    b_prev = None                         # b_j at the output columns (C, TILE)
    y = None                              # gated accumulator       (C, TILE)
    dilation = 1
    for j in range(depth):
        last = j == depth - 1
        if j > 0:
            stage_ref[:, pad:pad + W] = a    # restage level input for shifted reads
        # a_{j+1}: full window (feeds level j+1), except at the last level where it is
        # only needed at the output columns (for the gate).
        if last:
            a_new = conv_taps(h0_taps, dilation, a, halo, tile)
            gate_in = a_new
        else:
            a_new = conv_taps(h0_taps, dilation, a, 0, W)
            gate_in = a_new[:, halo:]        # 128-aligned slice -> free vreg select
        if j >= 1:
            term = b_prev * _sigmoid(gate_in)          # b_j * sigmoid(a_{j+1})
            # j == 1 reproduces the reference's stale-gated_b double count (y was 0).
            y = 2.0 * term if j == 1 else y + term
        if not last:
            # b_{j+1} only feeds the next level's gate -> output columns only.
            # (b_depth is never used by the reference, so it is skipped entirely.)
            b_prev = conv_taps(h1_taps, dilation, a, halo, tile)
        a = a_new
        dilation *= 2

    # --- channel mix (Dropout1d == identity in eval) + residual + LayerNorm ---------
    # The (C,C)x(C,TILE) matmul is tiny next to the VALU-bound conv chain and the MXU
    # is otherwise idle, so HIGHEST precision is kept (Mosaic supports DEFAULT/HIGHEST;
    # DEFAULT's 1-pass bf16 would risk the validation tolerance for negligible gain).
    z = jnp.dot(wmix_ref[...].astype(jnp.float32), y,
                preferred_element_type=jnp.float32,
                precision=jax.lax.Precision.HIGHEST)
    z = z + bmix_ref[...].astype(jnp.float32)          # (C,1) broadcast over TILE
    z = z + x_cur_ref[0].astype(jnp.float32)           # residual

    mean = jnp.mean(z, axis=0, keepdims=True)          # LayerNorm over the channel dim
    zc = z - mean
    var = jnp.mean(zc * zc, axis=0, keepdims=True)
    ln = zc * jax.lax.rsqrt(var + eps)
    ln = ln * gamma_ref[...].astype(jnp.float32) + beta_ref[...].astype(jnp.float32)

    o_ref[0] = ln.astype(o_ref.dtype)


@functools.partial(jax.jit, static_argnames=("depth", "filter_size", "eps", "tile"))
def multires_forward(x, h0, h1, w_mix, b_mix, gamma, beta,
                     *, depth, filter_size, eps=1e-5, tile=256):
    """x: (B, C, L) with C == num_heads == d.  Returns (B, C, L)."""
    B, C, L = x.shape
    K = filter_size
    assert depth >= 2, "reference gated_with_global_info requires depth >= 2"

    h0_2d = h0.reshape(C, K)
    h1_2d = h1.reshape(C, K)
    wmix_2d = w_mix.reshape(C, C)
    bmix_2d = b_mix.reshape(C, 1)
    gamma_2d = gamma.reshape(C, 1)
    beta_2d = beta.reshape(C, 1)

    # Causal receptive field of the whole conv tree and the largest single-level shift.
    rf = (K - 1) * (2 ** depth - 1)
    pad_zero = (K - 1) * (2 ** (depth - 1))
    halo = int(pl.cdiv(rf, 128)) * 128          # lane-aligned halo from previous tile
    pad = int(pl.cdiv(pad_zero, 128)) * 128     # lane-aligned zero-pad staging region

    tile_l = min(tile, L)
    assert tile_l >= halo and tile_l % halo == 0, (tile_l, halo)
    assert L % tile_l == 0, (L, tile_l)
    nt = L // tile_l
    prev_blocks = tile_l // halo                # halo-sized blocks per tile

    kernel = functools.partial(
        multires_kernel, depth=depth, filter_size=K, pad=pad, pad_zero=pad_zero,
        halo=halo, tile=tile_l, eps=eps)

    w_win = halo + tile_l
    flops = B * ((depth - 1) * 2 * K * C * nt * w_win    # full-window a convs
                 + 2 * K * C * L                         # last-level a conv (tile only)
                 + (depth - 1) * 2 * K * C * L           # b convs (tile only)
                 + (depth - 1) * 4 * C * L               # gating
                 + 2 * C * C * L                         # 1x1 channel mix
                 + 12 * C * L)                           # bias, residual, layer norm
    transcendentals = B * ((depth - 1) * C * L + L)
    bytes_accessed = 4 * (B * C * (L + nt * halo)        # x tiles + halo re-reads
                          + B * C * L                    # output
                          + 2 * C * K + C * C + 3 * C)

    out = pl.pallas_call(
        kernel,
        out_shape=jax.ShapeDtypeStruct((B, C, L), x.dtype),
        grid_spec=pltpu.PrefetchScalarGridSpec(
            num_scalar_prefetch=0,
            grid=(B, nt),
            in_specs=[
                # current L-tile of x
                pl.BlockSpec((1, C, tile_l), lambda b, t: (b, 0, t)),
                # last `halo` columns of the previous tile (clamped to block 0 at t==0)
                pl.BlockSpec((1, C, halo),
                             lambda b, t: (b, 0, jnp.maximum(t * prev_blocks - 1, 0))),
                pl.BlockSpec((C, K), lambda b, t: (0, 0)),   # h0
                pl.BlockSpec((C, K), lambda b, t: (0, 0)),   # h1
                pl.BlockSpec((C, C), lambda b, t: (0, 0)),   # 1x1 conv weight
                pl.BlockSpec((C, 1), lambda b, t: (0, 0)),   # 1x1 conv bias
                pl.BlockSpec((C, 1), lambda b, t: (0, 0)),   # LayerNorm gamma
                pl.BlockSpec((C, 1), lambda b, t: (0, 0)),   # LayerNorm beta
            ],
            out_specs=pl.BlockSpec((1, C, tile_l), lambda b, t: (b, 0, t)),
            scratch_shapes=[pltpu.VMEM((C, pad + halo + tile_l), jnp.float32)],
        ),
        compiler_params=pltpu.CompilerParams(
            dimension_semantics=("parallel", "parallel"),
            vmem_limit_bytes=48 * 1024 * 1024),
        cost_estimate=pl.CostEstimate(flops=flops,
                                      transcendentals=transcendentals,
                                      bytes_accessed=bytes_accessed),
    )(x, x, h0_2d, h1_2d, wmix_2d, bmix_2d, gamma_2d, beta_2d)
    return out


def _reference(x, h0, h1, w_mix, b_mix, gamma, beta, depth, filter_size, eps):
    """Pure-JAX mirror of the PyTorch forward (eval mode)."""
    B, C, L = x.shape
    K = filter_size
    h0w = h0.reshape(C, K).astype(jnp.float32)
    h1w = h1.reshape(C, K).astype(jnp.float32)

    def dwconv(a_pad, w, dil):
        out = jnp.zeros((B, C, L), jnp.float32)
        for k in range(K):
            out = out + w[None, :, k:k + 1] * a_pad[:, :, k * dil:k * dil + L]
        return out

    a = x.astype(jnp.float32)
    dilation = 1
    memory = []
    for _ in range(depth):
        P = dilation * (K - 1)
        a_pad = jnp.pad(a, ((0, 0), (0, 0), (P, 0)))
        b = dwconv(a_pad, h1w, dilation)
        a = dwconv(a_pad, h0w, dilation)
        memory.append((a, b))
        dilation *= 2

    # gated_with_global_info (incl. the stale-last-gated_b double count)
    y = jnp.zeros((B, C, L), jnp.float32)
    mem_rev = memory[::-1]
    gated_b = None
    for i in range(len(mem_rev)):
        a_i, _ = mem_rev[i]
        if i + 1 < len(mem_rev):
            _, next_b = mem_rev[i + 1]
            gated_b = next_b * (1.0 / (1.0 + jnp.exp(-a_i)))
        y = y + gated_b

    z = jnp.einsum("oc,bcl->bol", w_mix.reshape(C, C).astype(jnp.float32), y,
                   precision=jax.lax.Precision.HIGHEST)
    z = z + b_mix.reshape(1, C, 1).astype(jnp.float32)
    z = z + x.astype(jnp.float32)

    mean = jnp.mean(z, axis=1, keepdims=True)
    zc = z - mean
    var = jnp.mean(zc * zc, axis=1, keepdims=True)
    ln = zc * jax.lax.rsqrt(var + eps)
    ln = ln * gamma.reshape(1, C, 1) + beta.reshape(1, C, 1)
    return ln.astype(x.dtype)


if __name__ == "__main__":
    # Small shapes consistent with the module: x is (batch, n_channels, seq_len) with
    # n_channels == num_heads == d (required by the grouped conv + 1x1 mix + LayerNorm).
    # seq_len = 512 with tile = 256 exercises the L-tiling / halo path (grid = (2, 2)).
    batch, d, seq_len = 2, 16, 512
    num_heads = d
    filter_size = 4
    depth = 4
    eps = 1e-5

    key = jax.random.PRNGKey(0)
    kx, k0, k1, kw, kb, kg, kbe = jax.random.split(key, 7)

    x = jax.random.normal(kx, (batch, d, seq_len), jnp.float32)
    h0 = jax.random.normal(k0, (num_heads, 1, filter_size), jnp.float32) * 0.5
    h1 = jax.random.normal(k1, (num_heads, 1, filter_size), jnp.float32) * 0.5
    w_mix = jax.random.normal(kw, (d, d, 1), jnp.float32) * (1.0 / jnp.sqrt(d))
    b_mix = jax.random.normal(kb, (d,), jnp.float32) * 0.1
    gamma = 1.0 + 0.1 * jax.random.normal(kg, (d,), jnp.float32)
    beta = 0.1 * jax.random.normal(kbe, (d,), jnp.float32)

    out = multires_forward(x, h0, h1, w_mix, b_mix, gamma, beta,
                           depth=depth, filter_size=filter_size, eps=eps, tile=256)
    out = jax.block_until_ready(out)

    ref = _reference(x, h0, h1, w_mix, b_mix, gamma, beta, depth, filter_size, eps)
    assert out.shape == (batch, d, seq_len)
    max_err = float(jnp.max(jnp.abs(out - ref)))
    assert jnp.allclose(out, ref, atol=1e-3, rtol=1e-3), f"max abs err = {max_err}"

    print("KERNEL_OK")
</pallas_src>

<mosaic_0001>
module attributes {stable_mosaic.version = 11 : i64} {
  func.func @multires_kernel(%arg0: i32, %arg1: i32, %arg2: memref<1x16x256xf32, #tpu.memory_space<vmem>>, %arg3: memref<1x16x128xf32, #tpu.memory_space<vmem>>, %arg4: memref<16x4xf32, #tpu.memory_space<vmem>>, %arg5: memref<16x4xf32, #tpu.memory_space<vmem>>, %arg6: memref<16x16xf32, #tpu.memory_space<vmem>>, %arg7: memref<16x1xf32, #tpu.memory_space<vmem>>, %arg8: memref<16x1xf32, #tpu.memory_space<vmem>>, %arg9: memref<16x1xf32, #tpu.memory_space<vmem>>, %arg10: memref<1x16x256xf32, #tpu.memory_space<vmem>>, %arg11: memref<16x512xf32, #tpu.memory_space<vmem>>) attributes {dimension_semantics = [#tpu.dimension_semantics<parallel>, #tpu.dimension_semantics<parallel>], iteration_bounds = array<i64: 2, 2>, scalar_prefetch = 0 : i64, scratch_operands = 1 : i64, tpu.core_type = #tpu.core_type<tc>, window_params = [{transform_indices = @transform_0, window_bounds = array<i64: 1, 16, 256>}, {transform_indices = @transform_1, window_bounds = array<i64: 1, 16, 128>}, {pipeline_mode = #tpu.pipeline_mode<synchronous>, transform_indices = @transform_2, window_bounds = array<i64: 16, 4>}, {pipeline_mode = #tpu.pipeline_mode<synchronous>, transform_indices = @transform_3, window_bounds = array<i64: 16, 4>}, {pipeline_mode = #tpu.pipeline_mode<synchronous>, transform_indices = @transform_4, window_bounds = array<i64: 16, 16>}, {pipeline_mode = #tpu.pipeline_mode<synchronous>, transform_indices = @transform_5, window_bounds = array<i64: 16, 1>}, {pipeline_mode = #tpu.pipeline_mode<synchronous>, transform_indices = @transform_6, window_bounds = array<i64: 16, 1>}, {pipeline_mode = #tpu.pipeline_mode<synchronous>, transform_indices = @transform_7, window_bounds = array<i64: 16, 1>}, {transform_indices = @transform_8, window_bounds = array<i64: 1, 16, 256>}]} {
    %cst = arith.constant 0.000000e+00 : f32
    %0 = vector.broadcast %cst : f32 to vector<16x24xf32>
    %c0 = arith.constant 0 : index
    %c104 = arith.constant 104 : index
    %1 = vector.load %arg11[%c0, %c104] : memref<16x512xf32, #tpu.memory_space<vmem>>, vector<16x24xf32>
    tpu.vector_store %arg11[%c0, %c104], %0 {strides = array<i32>} : memref<16x512xf32, #tpu.memory_space<vmem>>, vector<16x24xf32>,
    %c0_i32 = arith.constant 0 : i32
    %2 = arith.cmpi eq, %arg1, %c0_i32 : i32
    %3 = arith.extui %2 : i1 to i32
    %c0_i32_0 = arith.constant 0 : i32
    %4 = arith.cmpi ne, %3, %c0_i32_0 : i32
    scf.if %4 {
      %cst_74 = arith.constant 0.000000e+00 : f32
      %190 = vector.broadcast %cst_74 : f32 to vector<16x128xf32>
      %c0_75 = arith.constant 0 : index
      %c128_76 = arith.constant 128 : index
      %191 = vector.load %arg11[%c0_75, %c128_76] : memref<16x512xf32, #tpu.memory_space<vmem>>, vector<16x128xf32>
      tpu.vector_store %arg11[%c0_75, %c128_76], %190 {strides = array<i32>} : memref<16x512xf32, #tpu.memory_space<vmem>>, vector<16x128xf32>,
    } else {
    }
    %c0_i32_1 = arith.constant 0 : i32
    %5 = arith.cmpi sgt, %arg1, %c0_i32_1 : i32
    %6 = arith.extui %5 : i1 to i32
    %c0_i32_2 = arith.constant 0 : i32
    %7 = arith.cmpi ne, %6, %c0_i32_2 : i32
    scf.if %7 {
      %c0_74 = arith.constant 0 : index
      %c0_75 = arith.constant 0 : index
      %c0_76 = arith.constant 0 : index
      %190 = vector.load %arg3[%c0_74, %c0_75, %c0_76] : memref<1x16x128xf32, #tpu.memory_space<vmem>>, vector<1x16x128xf32>
      %191 = vector.shape_cast %190 : vector<1x16x128xf32> to vector<16x128xf32>
      %c0_77 = arith.constant 0 : index
      %c128_78 = arith.constant 128 : index
      %192 = vector.load %arg11[%c0_77, %c128_78] : memref<16x512xf32, #tpu.memory_space<vmem>>, vector<16x128xf32>
      tpu.vector_store %arg11[%c0_77, %c128_78], %191 {strides = array<i32>} : memref<16x512xf32, #tpu.memory_space<vmem>>, vector<16x128xf32>,
    } else {
    }
    %c0_3 = arith.constant 0 : index
    %c0_4 = arith.constant 0 : index
    %c0_5 = arith.constant 0 : index
    %8 = vector.load %arg2[%c0_3, %c0_4, %c0_5] : memref<1x16x256xf32, #tpu.memory_space<vmem>>, vector<1x16x256xf32>
    %9 = vector.shape_cast %8 : vector<1x16x256xf32> to vector<16x256xf32>
    %c0_6 = arith.constant 0 : index
    %c256 = arith.constant 256 : index
    %10 = vector.load %arg11[%c0_6, %c256] : memref<16x512xf32, #tpu.memory_space<vmem>>, vector<16x256xf32>
    tpu.vector_store %arg11[%c0_6, %c256], %9 {strides = array<i32>} : memref<16x512xf32, #tpu.memory_space<vmem>>, vector<16x256xf32>,
    %c0_7 = arith.constant 0 : index
    %c0_8 = arith.constant 0 : index
    %11 = vector.load %arg4[%c0_7, %c0_8] : memref<16x4xf32, #tpu.memory_space<vmem>>, vector<16x4xf32>
    %c0_9 = arith.constant 0 : index
    %c0_10 = arith.constant 0 : index
    %12 = vector.load %arg5[%c0_9, %c0_10] : memref<16x4xf32, #tpu.memory_space<vmem>>, vector<16x4xf32>
    %13 = vector.extract_strided_slice %11 {offsets = [0, 0], sizes = [16, 1], strides = [1, 1]} : vector<16x4xf32> to vector<16x1xf32>
    %14 = vector.extract_strided_slice %11 {offsets = [0, 1], sizes = [16, 1], strides = [1, 1]} : vector<16x4xf32> to vector<16x1xf32>
    %15 = vector.extract_strided_slice %11 {offsets = [0, 2], sizes = [16, 1], strides = [1, 1]} : vector<16x4xf32> to vector<16x1xf32>
    %16 = vector.extract_strided_slice %11 {offsets = [0, 3], sizes = [16, 1], strides = [1, 1]} : vector<16x4xf32> to vector<16x1xf32>
    %17 = vector.extract_strided_slice %12 {offsets = [0, 0], sizes = [16, 1], strides = [1, 1]} : vector<16x4xf32> to vector<16x1xf32>
    %18 = vector.extract_strided_slice %12 {offsets = [0, 1], sizes = [16, 1], strides = [1, 1]} : vector<16x4xf32> to vector<16x1xf32>
    %19 = vector.extract_strided_slice %12 {offsets = [0, 2], sizes = [16, 1], strides = [1, 1]} : vector<16x4xf32> to vector<16x1xf32>
    %20 = vector.extract_strided_slice %12 {offsets = [0, 3], sizes = [16, 1], strides = [1, 1]} : vector<16x4xf32> to vector<16x1xf32>
    %c0_11 = arith.constant 0 : index
    %c128 = arith.constant 128 : index
    %21 = vector.load %arg11[%c0_11, %c128] : memref<16x512xf32, #tpu.memory_space<vmem>>, vector<16x384xf32>
    %22 = vector.broadcast %16 : vector<16x1xf32> to vector<16x384xf32>
    %23 = arith.mulf %22, %21 : vector<16x384xf32>
    %c0_12 = arith.constant 0 : index
    %c127 = arith.constant 127 : index
    %24 = vector.load %arg11[%c0_12, %c127] : memref<16x512xf32, #tpu.memory_space<vmem>>, vector<16x384xf32>
    %25 = vector.broadcast %15 : vector<16x1xf32> to vector<16x384xf32>
    %26 = arith.mulf %25, %24 : vector<16x384xf32>
    %27 = arith.addf %23, %26 : vector<16x384xf32>
    %c0_13 = arith.constant 0 : index
    %c126 = arith.constant 126 : index
    %28 = vector.load %arg11[%c0_13, %c126] : memref<16x512xf32, #tpu.memory_space<vmem>>, vector<16x384xf32>
    %29 = vector.broadcast %14 : vector<16x1xf32> to vector<16x384xf32>
    %30 = arith.mulf %29, %28 : vector<16x384xf32>
    %31 = arith.addf %27, %30 : vector<16x384xf32>
    %c0_14 = arith.constant 0 : index
    %c125 = arith.constant 125 : index
    %32 = vector.load %arg11[%c0_14, %c125] : memref<16x512xf32, #tpu.memory_space<vmem>>, vector<16x384xf32>
    %33 = vector.broadcast %13 : vector<16x1xf32> to vector<16x384xf32>
    %34 = arith.mulf %33, %32 : vector<16x384xf32>
    %35 = arith.addf %31, %34 : vector<16x384xf32>
    %36 = vector.extract_strided_slice %21 {offsets = [0, 128], sizes = [16, 256], strides = [1, 1]} : vector<16x384xf32> to vector<16x256xf32>
    %37 = vector.broadcast %20 : vector<16x1xf32> to vector<16x256xf32>
    %38 = arith.mulf %37, %36 : vector<16x256xf32>
    %c0_15 = arith.constant 0 : index
    %c255 = arith.constant 255 : index
    %39 = vector.load %arg11[%c0_15, %c255] : memref<16x512xf32, #tpu.memory_space<vmem>>, vector<16x256xf32>
    %40 = vector.broadcast %19 : vector<16x1xf32> to vector<16x256xf32>
    %41 = arith.mulf %40, %39 : vector<16x256xf32>
    %42 = arith.addf %38, %41 : vector<16x256xf32>
    %c0_16 = arith.constant 0 : index
    %c254 = arith.constant 254 : index
    %43 = vector.load %arg11[%c0_16, %c254] : memref<16x512xf32, #tpu.memory_space<vmem>>, vector<16x256xf32>
    %44 = vector.broadcast %18 : vector<16x1xf32> to vector<16x256xf32>
    %45 = arith.mulf %44, %43 : vector<16x256xf32>
    %46 = arith.addf %42, %45 : vector<16x256xf32>
    %c0_17 = arith.constant 0 : index
    %c253 = arith.constant 253 : index
    %47 = vector.load %arg11[%c0_17, %c253] : memref<16x512xf32, #tpu.memory_space<vmem>>, vector<16x256xf32>
    %48 = vector.broadcast %17 : vector<16x1xf32> to vector<16x256xf32>
    %49 = arith.mulf %48, %47 : vector<16x256xf32>
    %50 = arith.addf %46, %49 : vector<16x256xf32>
    %c0_18 = arith.constant 0 : index
    %c128_19 = arith.constant 128 : index
    %51 = vector.load %arg11[%c0_18, %c128_19] : memref<16x512xf32, #tpu.memory_space<vmem>>, vector<16x384xf32>
    tpu.vector_store %arg11[%c0_18, %c128_19], %35 {strides = array<i32>} : memref<16x512xf32, #tpu.memory_space<vmem>>, vector<16x384xf32>,
    %52 = vector.broadcast %16 : vector<16x1xf32> to vector<16x384xf32>
    %53 = arith.mulf %52, %35 : vector<16x384xf32>
    %c0_20 = arith.constant 0 : index
    %c126_21 = arith.constant 126 : index
    %54 = vector.load %arg11[%c0_20, %c126_21] : memref<16x512xf32, #tpu.memory_space<vmem>>, vector<16x384xf32>
    %55 = vector.broadcast %15 : vector<16x1xf32> to vector<16x384xf32>
    %56 = arith.mulf %55, %54 : vector<16x384xf32>
    %57 = arith.addf %53, %56 : vector<16x384xf32>
    %c0_22 = arith.constant 0 : index
    %c124 = arith.constant 124 : index
    %58 = vector.load %arg11[%c0_22, %c124] : memref<16x512xf32, #tpu.memory_space<vmem>>, vector<16x384xf32>
    %59 = vector.broadcast %14 : vector<16x1xf32> to vector<16x384xf32>
    %60 = arith.mulf %59, %58 : vector<16x384xf32>
    %61 = arith.addf %57, %60 : vector<16x384xf32>
    %c0_23 = arith.constant 0 : index
    %c122 = arith.constant 122 : index
    %62 = vector.load %arg11[%c0_23, %c122] : memref<16x512xf32, #tpu.memory_space<vmem>>, vector<16x384xf32>
    %63 = vector.broadcast %13 : vector<16x1xf32> to vector<16x384xf32>
    %64 = arith.mulf %63, %62 : vector<16x384xf32>
    %65 = arith.addf %61, %64 : vector<16x384xf32>
    %66 = vector.extract_strided_slice %65 {offsets = [0, 128], sizes = [16, 256], strides = [1, 1]} : vector<16x384xf32> to vector<16x256xf32>
    %cst_24 = arith.constant 5.000000e-01 : f32
    %67 = vector.broadcast %cst_24 : f32 to vector<16x256xf32>
    %68 = arith.mulf %67, %66 : vector<16x256xf32>
    %69 = math.tanh %68 : vector<16x256xf32>
    %cst_25 = arith.constant 5.000000e-01 : f32
    %70 = vector.broadcast %cst_25 : f32 to vector<16x256xf32>
    %71 = arith.mulf %70, %69 : vector<16x256xf32>
    %cst_26 = arith.constant 5.000000e-01 : f32
    %72 = vector.broadcast %cst_26 : f32 to vector<16x256xf32>
    %73 = arith.addf %71, %72 : vector<16x256xf32>
    %74 = arith.mulf %50, %73 : vector<16x256xf32>
    %cst_27 = arith.constant 2.000000e+00 : f32
    %75 = vector.broadcast %cst_27 : f32 to vector<16x256xf32>
    %76 = arith.mulf %75, %74 : vector<16x256xf32>
    %77 = vector.extract_strided_slice %35 {offsets = [0, 128], sizes = [16, 256], strides = [1, 1]} : vector<16x384xf32> to vector<16x256xf32>
    %78 = vector.broadcast %20 : vector<16x1xf32> to vector<16x256xf32>
    %79 = arith.mulf %78, %77 : vector<16x256xf32>
    %c0_28 = arith.constant 0 : index
    %c254_29 = arith.constant 254 : index
    %80 = vector.load %arg11[%c0_28, %c254_29] : memref<16x512xf32, #tpu.memory_space<vmem>>, vector<16x256xf32>
    %81 = vector.broadcast %19 : vector<16x1xf32> to vector<16x256xf32>
    %82 = arith.mulf %81, %80 : vector<16x256xf32>
    %83 = arith.addf %79, %82 : vector<16x256xf32>
    %c0_30 = arith.constant 0 : index
    %c252 = arith.constant 252 : index
    %84 = vector.load %arg11[%c0_30, %c252] : memref<16x512xf32, #tpu.memory_space<vmem>>, vector<16x256xf32>
    %85 = vector.broadcast %18 : vector<16x1xf32> to vector<16x256xf32>
    %86 = arith.mulf %85, %84 : vector<16x256xf32>
    %87 = arith.addf %83, %86 : vector<16x256xf32>
    %c0_31 = arith.constant 0 : index
    %c250 = arith.constant 250 : index
    %88 = vector.load %arg11[%c0_31, %c250] : memref<16x512xf32, #tpu.memory_space<vmem>>, vector<16x256xf32>
    %89 = vector.broadcast %17 : vector<16x1xf32> to vector<16x256xf32>
    %90 = arith.mulf %89, %88 : vector<16x256xf32>
    %91 = arith.addf %87, %90 : vector<16x256xf32>
    %c0_32 = arith.constant 0 : index
    %c128_33 = arith.constant 128 : index
    %92 = vector.load %arg11[%c0_32, %c128_33] : memref<16x512xf32, #tpu.memory_space<vmem>>, vector<16x384xf32>
    tpu.vector_store %arg11[%c0_32, %c128_33], %65 {strides = array<i32>} : memref<16x512xf32, #tpu.memory_space<vmem>>, vector<16x384xf32>,
    %93 = vector.broadcast %16 : vector<16x1xf32> to vector<16x384xf32>
    %94 = arith.mulf %93, %65 : vector<16x384xf32>
    %c0_34 = arith.constant 0 : index
    %c124_35 = arith.constant 124 : index
    %95 = vector.load %arg11[%c0_34, %c124_35] : memref<16x512xf32, #tpu.memory_space<vmem>>, vector<16x384xf32>
    %96 = vector.broadcast %15 : vector<16x1xf32> to vector<16x384xf32>
    %97 = arith.mulf %96, %95 : vector<16x384xf32>
    %98 = arith.addf %94, %97 : vector<16x384xf32>
    %c0_36 = arith.constant 0 : index
    %c120 = arith.constant 120 : index
    %99 = vector.load %arg11[%c0_36, %c120] : memref<16x512xf32, #tpu.memory_space<vmem>>, vector<16x384xf32>
    %100 = vector.broadcast %14 : vector<16x1xf32> to vector<16x384xf32>
    %101 = arith.mulf %100, %99 : vector<16x384xf32>
    %102 = arith.addf %98, %101 : vector<16x384xf32>
    %c0_37 = arith.constant 0 : index
    %c116 = arith.constant 116 : index
    %103 = vector.load %arg11[%c0_37, %c116] : memref<16x512xf32, #tpu.memory_space<vmem>>, vector<16x384xf32>
    %104 = vector.broadcast %13 : vector<16x1xf32> to vector<16x384xf32>
    %105 = arith.mulf %104, %103 : vector<16x384xf32>
    %106 = arith.addf %102, %105 : vector<16x384xf32>
    %107 = vector.extract_strided_slice %106 {offsets = [0, 128], sizes = [16, 256], strides = [1, 1]} : vector<16x384xf32> to vector<16x256xf32>
    %cst_38 = arith.constant 5.000000e-01 : f32
    %108 = vector.broadcast %cst_38 : f32 to vector<16x256xf32>
    %109 = arith.mulf %108, %107 : vector<16x256xf32>
    %110 = math.tanh %109 : vector<16x256xf32>
    %cst_39 = arith.constant 5.000000e-01 : f32
    %111 = vector.broadcast %cst_39 : f32 to vector<16x256xf32>
    %112 = arith.mulf %111, %110 : vector<16x256xf32>
    %cst_40 = arith.constant 5.000000e-01 : f32
    %113 = vector.broadcast %cst_40 : f32 to vector<16x256xf32>
    %114 = arith.addf %112, %113 : vector<16x256xf32>
    %115 = arith.mulf %91, %114 : vector<16x256xf32>
    %116 = arith.addf %76, %115 : vector<16x256xf32>
    %117 = vector.extract_strided_slice %65 {offsets = [0, 128], sizes = [16, 256], strides = [1, 1]} : vector<16x384xf32> to vector<16x256xf32>
    %118 = vector.broadcast %20 : vector<16x1xf32> to vector<16x256xf32>
    %119 = arith.mulf %118, %117 : vector<16x256xf32>
    %c0_41 = arith.constant 0 : index
    %c252_42 = arith.constant 252 : index
    %120 = vector.load %arg11[%c0_41, %c252_42] : memref<16x512xf32, #tpu.memory_space<vmem>>, vector<16x256xf32>
    %121 = vector.broadcast %19 : vector<16x1xf32> to vector<16x256xf32>
    %122 = arith.mulf %121, %120 : vector<16x256xf32>
    %123 = arith.addf %119, %122 : vector<16x256xf32>
    %c0_43 = arith.constant 0 : index
    %c248 = arith.constant 248 : index
    %124 = vector.load %arg11[%c0_43, %c248] : memref<16x512xf32, #tpu.memory_space<vmem>>, vector<16x256xf32>
    %125 = vector.broadcast %18 : vector<16x1xf32> to vector<16x256xf32>
    %126 = arith.mulf %125, %124 : vector<16x256xf32>
    %127 = arith.addf %123, %126 : vector<16x256xf32>
    %c0_44 = arith.constant 0 : index
    %c244 = arith.constant 244 : index
    %128 = vector.load %arg11[%c0_44, %c244] : memref<16x512xf32, #tpu.memory_space<vmem>>, vector<16x256xf32>
    %129 = vector.broadcast %17 : vector<16x1xf32> to vector<16x256xf32>
    %130 = arith.mulf %129, %128 : vector<16x256xf32>
    %131 = arith.addf %127, %130 : vector<16x256xf32>
    %c0_45 = arith.constant 0 : index
    %c128_46 = arith.constant 128 : index
    %132 = vector.load %arg11[%c0_45, %c128_46] : memref<16x512xf32, #tpu.memory_space<vmem>>, vector<16x384xf32>
    tpu.vector_store %arg11[%c0_45, %c128_46], %106 {strides = array<i32>} : memref<16x512xf32, #tpu.memory_space<vmem>>, vector<16x384xf32>,
    %133 = vector.extract_strided_slice %106 {offsets = [0, 128], sizes = [16, 256], strides = [1, 1]} : vector<16x384xf32> to vector<16x256xf32>
    %134 = vector.broadcast %16 : vector<16x1xf32> to vector<16x256xf32>
    %135 = arith.mulf %134, %133 : vector<16x256xf32>
    %c0_47 = arith.constant 0 : index
    %c248_48 = arith.constant 248 : index
    %136 = vector.load %arg11[%c0_47, %c248_48] : memref<16x512xf32, #tpu.memory_space<vmem>>, vector<16x256xf32>
    %137 = vector.broadcast %15 : vector<16x1xf32> to vector<16x256xf32>
    %138 = arith.mulf %137, %136 : vector<16x256xf32>
    %139 = arith.addf %135, %138 : vector<16x256xf32>
    %c0_49 = arith.constant 0 : index
    %c240 = arith.constant 240 : index
    %140 = vector.load %arg11[%c0_49, %c240] : memref<16x512xf32, #tpu.memory_space<vmem>>, vector<16x256xf32>
    %141 = vector.broadcast %14 : vector<16x1xf32> to vector<16x256xf32>
    %142 = arith.mulf %141, %140 : vector<16x256xf32>
    %143 = arith.addf %139, %142 : vector<16x256xf32>
    %c0_50 = arith.constant 0 : index
    %c232 = arith.constant 232 : index
    %144 = vector.load %arg11[%c0_50, %c232] : memref<16x512xf32, #tpu.memory_space<vmem>>, vector<16x256xf32>
    %145 = vector.broadcast %13 : vector<16x1xf32> to vector<16x256xf32>
    %146 = arith.mulf %145, %144 : vector<16x256xf32>
    %147 = arith.addf %143, %146 : vector<16x256xf32>
    %cst_51 = arith.constant 5.000000e-01 : f32
    %148 = vector.broadcast %cst_51 : f32 to vector<16x256xf32>
    %149 = arith.mulf %148, %147 : vector<16x256xf32>
    %150 = math.tanh %149 : vector<16x256xf32>
    %cst_52 = arith.constant 5.000000e-01 : f32
    %151 = vector.broadcast %cst_52 : f32 to vector<16x256xf32>
    %152 = arith.mulf %151, %150 : vector<16x256xf32>
    %cst_53 = arith.constant 5.000000e-01 : f32
    %153 = vector.broadcast %cst_53 : f32 to vector<16x256xf32>
    %154 = arith.addf %152, %153 : vector<16x256xf32>
    %155 = arith.mulf %131, %154 : vector<16x256xf32>
    %156 = arith.addf %116, %155 : vector<16x256xf32>
    %c0_54 = arith.constant 0 : index
    %c0_55 = arith.constant 0 : index
    %157 = vector.load %arg6[%c0_54, %c0_55] : memref<16x16xf32, #tpu.memory_space<vmem>>, vector<16x16xf32>
    %cst_56 = arith.constant dense<0.000000e+00> : vector<16x256xf32>
    %158 = tpu.matmul %157, %156, %cst_56 {dimension_numbers = #tpu.dot_dimension_numbers<[1], [0], [0], [1], [0, 0, 1, 1], [], []>, precision = #tpu.contract_precision<fp32>} : vector<16x16xf32>, vector<16x256xf32>, vector<16x256xf32> -> vector<16x256xf32>
    %c0_57 = arith.constant 0 : index
    %c0_58 = arith.constant 0 : index
    %159 = vector.load %arg7[%c0_57, %c0_58] : memref<16x1xf32, #tpu.memory_space<vmem>>, vector<16x1xf32>
    %160 = vector.broadcast %159 : vector<16x1xf32> to vector<16x256xf32>
    %161 = arith.addf %158, %160 : vector<16x256xf32>
    %c0_59 = arith.constant 0 : index
    %c0_60 = arith.constant 0 : index
    %c0_61 = arith.constant 0 : index
    %162 = vector.load %arg2[%c0_59, %c0_60, %c0_61] : memref<1x16x256xf32, #tpu.memory_space<vmem>>, vector<1x16x256xf32>
    %163 = vector.shape_cast %162 : vector<1x16x256xf32> to vector<16x256xf32>
    %164 = arith.addf %161, %163 : vector<16x256xf32>
    %cst_62 = arith.constant dense<0.000000e+00> : vector<256xf32>
    %165 = vector.multi_reduction <add>, %164, %cst_62 [0] : vector<16x256xf32> to vector<256xf32>
    %166 = vector.shape_cast %165 : vector<256xf32> to vector<1x256xf32>
    %cst_63 = arith.constant 1.600000e+01 : f32
    %167 = vector.broadcast %cst_63 : f32 to vector<1x256xf32>
    %168 = arith.divf %166, %167 : vector<1x256xf32>
    %169 = vector.broadcast %168 : vector<1x256xf32> to vector<16x256xf32>
    %170 = arith.subf %164, %169 : vector<16x256xf32>
    %171 = arith.mulf %170, %170 : vector<16x256xf32>
    %cst_64 = arith.constant dense<0.000000e+00> : vector<256xf32>
    %172 = vector.multi_reduction <add>, %171, %cst_64 [0] : vector<16x256xf32> to vector<256xf32>
    %173 = vector.shape_cast %172 : vector<256xf32> to vector<1x256xf32>
    %cst_65 = arith.constant 1.600000e+01 : f32
    %174 = vector.broadcast %cst_65 : f32 to vector<1x256xf32>
    %175 = arith.divf %173, %174 : vector<1x256xf32>
    %cst_66 = arith.constant 9.99999974E-6 : f32
    %176 = vector.broadcast %cst_66 : f32 to vector<1x256xf32>
    %177 = arith.addf %175, %176 : vector<1x256xf32>
    %178 = math.rsqrt %177 : vector<1x256xf32>
    %179 = vector.broadcast %178 : vector<1x256xf32> to vector<16x256xf32>
    %180 = arith.mulf %170, %179 : vector<16x256xf32>
    %c0_67 = arith.constant 0 : index
    %c0_68 = arith.constant 0 : index
    %181 = vector.load %arg8[%c0_67, %c0_68] : memref<16x1xf32, #tpu.memory_space<vmem>>, vector<16x1xf32>
    %182 = vector.broadcast %181 : vector<16x1xf32> to vector<16x256xf32>
    %183 = arith.mulf %180, %182 : vector<16x256xf32>
    %c0_69 = arith.constant 0 : index
    %c0_70 = arith.constant 0 : index
    %184 = vector.load %arg9[%c0_69, %c0_70] : memref<16x1xf32, #tpu.memory_space<vmem>>, vector<16x1xf32>
    %185 = vector.broadcast %184 : vector<16x1xf32> to vector<16x256xf32>
    %186 = arith.addf %183, %185 : vector<16x256xf32>
    %c0_71 = arith.constant 0 : index
    %c0_72 = arith.constant 0 : index
    %c0_73 = arith.constant 0 : index
    %187 = vector.load %arg10[%c0_71, %c0_72, %c0_73] : memref<1x16x256xf32, #tpu.memory_space<vmem>>, vector<1x16x256xf32>
    %188 = vector.shape_cast %187 : vector<1x16x256xf32> to vector<16x256xf32>
    %189 = vector.shape_cast %186 : vector<16x256xf32> to vector<1x16x256xf32>
    tpu.vector_store %arg10[%c0_71, %c0_72, %c0_73], %189 {strides = array<i32>} : memref<1x16x256xf32, #tpu.memory_space<vmem>>, vector<1x16x256xf32>,
    return
  }
  func.func @transform_0(%arg0: i32, %arg1: i32) -> (i32, i32, i32) {
    %c0_i32 = arith.constant 0 : i32
    %c0_i32_0 = arith.constant 0 : i32
    return %arg0, %c0_i32, %arg1 : i32, i32, i32
  }
  func.func @transform_1(%arg0: i32, %arg1: i32) -> (i32, i32, i32) {
    %c2_i32 = arith.constant 2 : i32
    %0 = arith.muli %arg1, %c2_i32 : i32
    %c1_i32 = arith.constant 1 : i32
    %1 = arith.subi %0, %c1_i32 : i32
    %c0_i32 = arith.constant 0 : i32
    %2 = arith.maxsi %1, %c0_i32 : i32
    %c0_i32_0 = arith.constant 0 : i32
    %c0_i32_1 = arith.constant 0 : i32
    return %arg0, %c0_i32_0, %2 : i32, i32, i32
  }
  func.func @transform_2(%arg0: i32, %arg1: i32) -> (i32, i32) {
    %c0_i32 = arith.constant 0 : i32
    %c0_i32_0 = arith.constant 0 : i32
    %c0_i32_1 = arith.constant 0 : i32
    return %c0_i32, %c0_i32_0 : i32, i32
  }
  func.func @transform_3(%arg0: i32, %arg1: i32) -> (i32, i32) {
    %c0_i32 = arith.constant 0 : i32
    %c0_i32_0 = arith.constant 0 : i32
    %c0_i32_1 = arith.constant 0 : i32
    return %c0_i32, %c0_i32_0 : i32, i32
  }
  func.func @transform_4(%arg0: i32, %arg1: i32) -> (i32, i32) {
    %c0_i32 = arith.constant 0 : i32
    %c0_i32_0 = arith.constant 0 : i32
    %c0_i32_1 = arith.constant 0 : i32
    return %c0_i32, %c0_i32_0 : i32, i32
  }
  func.func @transform_5(%arg0: i32, %arg1: i32) -> (i32, i32) {
    %c0_i32 = arith.constant 0 : i32
    %c0_i32_0 = arith.constant 0 : i32
    %c0_i32_1 = arith.constant 0 : i32
    return %c0_i32, %c0_i32_0 : i32, i32
  }
  func.func @transform_6(%arg0: i32, %arg1: i32) -> (i32, i32) {
    %c0_i32 = arith.constant 0 : i32
    %c0_i32_0 = arith.constant 0 : i32
    %c0_i32_1 = arith.constant 0 : i32
    return %c0_i32, %c0_i32_0 : i32, i32
  }
  func.func @transform_7(%arg0: i32, %arg1: i32) -> (i32, i32) {
    %c0_i32 = arith.constant 0 : i32
    %c0_i32_0 = arith.constant 0 : i32
    %c0_i32_1 = arith.constant 0 : i32
    return %c0_i32, %c0_i32_0 : i32, i32
  }
  func.func @transform_8(%arg0: i32, %arg1: i32) -> (i32, i32, i32) {
    %c0_i32 = arith.constant 0 : i32
    %c0_i32_0 = arith.constant 0 : i32
    return %arg0, %c0_i32, %arg1 : i32, i32, i32
  }
}

</mosaic_0001>

<bundles_post_ra>
// kernel: multires_forward.1
= control target key start
LH: loop header
LB: loop body
LE: loop exit
PB: predicated region body
PF: predicated region fallthrough
CT: control target
= control target key end

     0   :  { %s4089_s0 = inlined_call_operand.hbm [shape: f32[2,16,512], index: 0, kind: input, shape index: {}, may-alias: {0,1}]   ;;  %s4090_s1 = inlined_call_operand.hbm [shape: f32[2,16,512], index: 1, kind: input, shape index: {}, may-alias: {0,1}]   ;;  %s4091_s2 = inlined_call_operand.vmem [shape: f32[16,4], index: 2, kind: input, shape index: {}]   ;;  %s4092_s3 = inlined_call_operand.vmem [shape: f32[16,4], index: 3, kind: input, shape index: {}]   ;;  %s4093_s4 = inlined_call_operand.vmem [shape: f32[16,16], index: 4, kind: input, shape index: {}]   ;;  %s4094_s5 = inlined_call_operand.vmem [shape: f32[16,1], index: 5, kind: input, shape index: {}]   ;;  %s4095_s6 = inlined_call_operand.vmem [shape: f32[16,1], index: 6, kind: input, shape index: {}]   ;;  %s4096_s7 = inlined_call_operand.vmem [shape: f32[16,1], index: 7, kind: input, shape index: {}]   ;;  %s4097_s8 = inlined_call_operand.hbm [shape: f32[2,16,512], index: 8, kind: output, shape index: {}]  }
   0x1   :  { %4122 = sst [smem:[#allocation29_spill]] %s4089_s0 }
   0x2   :  { %4123 = sst [smem:[#allocation30_spill]] %s4091_s2 }
   0x3   :  { %4124 = sst [smem:[#allocation31_spill]] %s4092_s3 }
   0x4   :  { %4125 = sst [smem:[#allocation32_spill]] %s4093_s4 }
   0x5   :  { %4126 = sst [smem:[#allocation33_spill]] %s4094_s5 }
   0x6   :  { %4127 = sst [smem:[#allocation34_spill]] %s4095_s6 }
   0x7   :  { %4128 = sst [smem:[#allocation35_spill]] %s4096_s7 }
   0x8   :  { %4129 = sst [smem:[#allocation36_spill]] %s4097_s8 }
   0x9   :  { %13 = vsyncpa [#allocation4], 0 }
   0xa   :  { %15 = vsyncpa [#allocation4 + $0x1], 0 }
   0xb   :  { %16 = vsyncpa [#allocation7], 0 }
   0xc   :  { %18 = vsyncpa [#allocation7 + $0x1], 0 }
   0xd   :  { %19 = vsyncpa [#allocation5], 0 }
   0xe   :  { %21 = vsyncpa [#allocation5 + $0x1], 0  ;;  %s2836_s27 = smov 0   ;;  %s2838_s28 = smov 0  }
   0xf   :  { %s2840_s29 = smov 0   ;;  %s2842_s30 = smov 0  }
  0x10   :  { %s2844_s9 = smov 0   ;;  %s2846_s10 = smov 0  }
  0x11   :  { %s2848_s11 = smov 0   ;;  %s2850_s12 = smov 0  }
  0x12   :  { %s2852_s13 = smov 0   ;;  %s2854_s14 = smov 0  }
  0x13   :  { %s2856_s15 = smov 0  }
  0x14 LB: > { %4130 = sst [smem:[#allocation12_spill]] %s2736_s30  ;;  %s2329_s16 = sadd.s32 4294967295, %s2764_s15   ;;  %s2764_s15 = sphi %s2856_s15, %s27_s15   ;;  %s2760_s14 = sphi %s2854_s14, %s4203_s14   ;;  %s2756_s13 = sphi %s2852_s13, %s4194_s13   ;;  %s2752_s12 = sphi %s2850_s12, %s4202_s12   ;;  %s2748_s11 = sphi %s2848_s11, %s4193_s11   ;;  %s2744_s10 = sphi %s2846_s10, %s4201_s10   ;;  %s2740_s9 = sphi %s2844_s9, %s4200_s9   ;;  %s2736_s30 = sphi %s2842_s30, %s4199_s30   ;;  %s2732_s29 = sphi %s2840_s29, %s4198_s29   ;;  %s2728_s28 = sphi %s2838_s28, %s4197_s28   ;;  %s2724_s27 = sphi %s2836_s27, %s4196_s27  }
  0x15   : > { %4131 = sst [smem:[#allocation13_spill]] %s2752_s12  ;;  %s2330_s17 = sadd.s32 4294967294, %s2764_s15  }
  0x16   : > { %4132 = sst [smem:[#allocation14_spill]] %s2756_s13  ;;  %s36_s18 = sadd.s32 1, %s2756_s13 }
  0x17   : > { %s39_s19 = sadd.s32 1, %s2760_s14  ;;  %p37_p0 = scmp.ge.s32.totalorder %s36_s18, 2 }
  0x18   : > { %p55_p1 = scmp.ne.s32.totalorder %s2744_s10, %s2740_s9  ;;  %p4107_p2 = scmp.eq.s32.totalorder %s2764_s15, 0 }
  0x19   : > { %s4205_s18 = smov (%p37_p0, %s36_s18), 0  ;;  %s4207_s19 = smov (!%p37_p0, %s39_s19), %s2760_s14 }
  0x1a   : > { %4133 = sst [smem:[#allocation15_spill]] %s4205_s18  ;;  %p2911_p3 = por %p4107_p2, %p55_p1 }
  0x1b   : > { %p61_p4 = scmp.ne.s32.totalorder %s2740_s9, %s2736_s30  ;;  %p2917_p5 = scmp.eq.s32.totalorder %s2329_s16, 0 }
  0x1c   : > { %s2331_s24 = sshll.u32 %s2756_s13, 1  ;;  %p249_p6 = scmp.eq.s32.totalorder %s2329_s16, 3 }
  0x1d   : > { %p2924_p7 = por %p2917_p5, %p61_p4  ;;  %s2928_s26 = sadd.s32 4294967295, %s2331_s24 }
  0x1e   : > { %p2934_p9 = por %p249_p6, %p55_p1  ;;  %p255_p10 = scmp.eq.s32.totalorder %s2330_s17, 3 }
  0x1f   : > { %s4136_s25 = scalar_select %p2924_p7, 1, 0 }
  0x20   : > { %s4137_s20 = scalar_select %p2934_p9, 1, 0 }
  0x21   : > { %p4106_p11 = scmp.lt.s32.totalorder %s2764_s15, 4  ;;  %s293_s16 = sand.u32 1, %s2744_s10  }
  0x22   : > { %p2940_p12 = por %p255_p10, %p61_p4  ;;  %s2337_s30 = sshll.u32 %s293_s16, 5 }
  0x23   : > { %s2339_s8 = sshll.u32 %s2760_s14, 3  ;;  %s297_s7 = scalar_lea.vmem [#allocation3], %s2337_s30 }
  0x24   : > { %s4138_s21 = scalar_select %p2940_p12, 1, 0 }
  0x25   : > { %s303_s12 = sadd.s32 %s2339_s8, %s2331_s24  ;;  %s306_s6 = sshll.u32 %s297_s7, 4  ;;  %s2952_s6 = int_to_ptr.vmem [resolvable:$true] %s306_s6 }
  0x26   : > { %s2340_s4 = sshll.u32 %s303_s12, 7  ;;  %s4139_s0 = sld [smem:[#allocation29_spill]] }
  0x27   : > { %p2958_p13 = pnand %p4106_p11, %p2911_p3  ;;  %s2963_s7 = scalar_lea.sflag [#allocation4], %s293_s16 }
  0x29   : > { %p2580_p4 = pneg %p2958_p13 }
  0x2c   : > { %s2950_s2 = scalar_lea.hbm %s4139_s0, %s2340_s4  ;;  %s2583_s30 = scalar_lea.hbm %s4139_s0, 2048 }
  0x2d   : > { %s2578_s3 = scalar_lea.hbm %s2950_s2, 512  ;;  %p2584_p3 = scmp.lt.u32.totalorder %s2950_s2, %s4139_s0 }
  0x2e   : > { %p2579_p1 = scmp.ne.s32.totalorder %s2950_s2, %s2578_s3  ;;  %p2585_p11 = scmp.lt.u32.totalorder %s2583_s30, %s2578_s3 }
  0x2f   : > { %p2587_p8 = scmp.lt.u32.totalorder %s2578_s3, %s2950_s2 }
  0x30   : > { %p2581_p6 = pnand %p2580_p4, %p2579_p1  ;;  %p2586_p2 = por %p2585_p11, %p2584_p3 }
  0x32   : > { %p2582_p10 = pneg %p2581_p6  ;;  %p2588_p0 = por %p2587_p8, %p2586_p2 }
  0x34   : > { %p2589_p12 = pnand %p2588_p0, %p2582_p10 }
  0x36   : > { %2592 = shalt.err (!%p2589_p12)
}
  0x37   : > { %s2593_s24 = scalar_lea.vmem %s2952_s6, 512  ;;  %s2766_s16 = smov [#allocation3]  }
  0x38   : > { %p2594_p1 = scmp.ne.s32.totalorder %s2952_s6, %s2593_s24  ;;  %s2598_s4 = sshll.u32 %s2766_s16, 4  ;;  %s2599_s4 = int_to_ptr.vmem [resolvable:$false] %s2598_s4 }
  0x39   : > { %s2600_s5 = scalar_lea.vmem %s2599_s4, 1024  ;;  %p2601_p7 = scmp.lt.s32.totalorder %s2952_s6, %s2599_s4 }
  0x3a   : > { %p2596_p6 = pnand %p2594_p1, %p2580_p4  ;;  %p2602_p11 = scmp.lt.s32.totalorder %s2600_s5, %s2593_s24 }
  0x3c   : > { %p2597_p9 = pneg %p2596_p6  ;;  %p2603_p3 = por %p2602_p11, %p2601_p7 }
  0x3e   : > { %p2604_p2 = pnand %p2603_p3, %p2597_p9 }
  0x40   : > { %2607 = shalt.err (!%p2604_p2)
}
  0x41   : > { %s4110_s3 = smov 512   ;;  %s2768_s30 = smov 256  }
  0x42   : > { %s2769_s12 = smov 16   ;;  %p340_p7 = scmp.lt.s32.totalorder %s2764_s15, 5 }
  0x43   : > { %2415 = dma.hbm_to_vmem [thread:$0]  (!%p2958_p13), %s2950_s2, 512, %s2952_s6, %s2963_s7, %s4110_s3, %s2768_s30, %s2769_s12  }
  0x44   : > { %p4141_p8 = scmp.ge.s32.totalorder %s2764_s15, 1  ;;  %p41_p12 = scmp.ge.s32.totalorder %s4207_s19, 2 }
  0x45   : > { %s2333_s24 = sshll.u32 %s4205_s18, 1  ;;  %p4143_p0 = scmp.gt.s32.totalorder %s2928_s26, 0 }
  0x46   : > { %p2995_p9 = pnand %p4141_p8, %p340_p7  ;;  %s4211_s19 = smov (%p41_p12, %s4207_s19), 0 }
  0x47   : > { %s4209_s26 = smov (!%p4143_p0, %s2928_s26), 0  ;;  %4144 = sst [smem:[#allocation16_spill]] %s4211_s19 }
  0x48   : > { %s2334_s17 = sadd.s32 4294967295, %s2333_s24  ;;  %s84_s2 = sadd.s32 1, %s2732_s29 }
  0x49   : > { %s43_s6 = ssub.s32 %s2760_s14, %s4211_s19  ;;  %p77_p13 = scmp.gt.s32.totalorder %s2334_s17, 0 }
  0x4a   : > { %s4145_s7 = ssub.s32 %s2756_s13, %s4205_s18  ;;  %p91_p4 = scmp.ne.s32.totalorder %s2732_s29, %s2728_s28 }
  0x4b   : > { %s45_s16 = sor.u32 %s4145_s7, %s43_s6  ;;  %p97_p1 = scmp.ne.s32.totalorder %s2728_s28, %s2724_s27 }
  0x4c   : > { %p46_p10 = scmp.eq.s32.totalorder %s45_s16, 0  ;;  %s4213_s17 = smov (!%p77_p13, %s2334_s17), 0 }
  0x4d   : > { %s4146_s4 = sadd.s32 1, %s2744_s10  ;;  %s80_s30 = ssub.s32 %s4209_s26, %s4213_s17 }
  0x4e   : > { %s3020_s5 = scalar_select %p46_p10, %s2744_s10, %s4146_s4  }
  0x4f   : > { %p4148_p6 = scmp.eq.s32.totalorder %s2764_s15, 0  ;;  %s81_s24 = sor.u32 %s80_s30, %s43_s6 }
  0x50   : > { %4147 = sst [smem:[#allocation17_spill]] %s3020_s5  ;;  %p3030_p3 = por %p97_p1, %p2917_p5 }
  0x51   : > { %p3024_p11 = por %p91_p4, %p4148_p6  ;;  %p82_p2 = scmp.eq.s32.totalorder %s81_s24, 0 }
  0x52   : > { %s4150_s3 = scalar_select %p3030_p3, 1, 0 }
  0x53   : > { %s316_s27 = sand.u32 1, %s2732_s29   ;;  %s329_s4 = sadd.s32 %s2339_s8, %s4209_s26 }
  0x54   : > { %s2341_s7 = sshll.u32 %s316_s27, 4  ;;  %s2345_s17 = sshll.u32 %s329_s4, 7 }
  0x55   : > { %s3036_s16 = scalar_select %p82_p2, %s2732_s29, %s84_s2  }
  0x56   : > { %s320_s0 = scalar_lea.vmem [#allocation6], %s2341_s7  ;;  %s3043_s5 = scalar_lea.hbm %s4090_s1, %s2345_s17 }
  0x57   : > { %s332_s19 = sshll.u32 %s320_s0, 4  ;;  %p4151_p5 = scmp.lt.s32.totalorder %s2764_s15, 4  ;;  %s3045_s19 = int_to_ptr.vmem [resolvable:$true] %s332_s19 }
  0x58   : > { %s3055_s0 = scalar_lea.sflag [#allocation7], %s316_s27  ;;  %s2608_s8 = scalar_lea.hbm %s3043_s5, 256 }
  0x59   : > { %p3051_p7 = pnand %p4151_p5, %p3024_p11  ;;  %p2609_p8 = scmp.ne.s32.totalorder %s3043_s5, %s2608_s8 }
  0x5a   : > { %s2613_s26 = scalar_lea.hbm %s4090_s1, 2048  ;;  %p2614_p4 = scmp.lt.u32.totalorder %s3043_s5, %s4090_s1 }
  0x5b   : > { %p2610_p12 = pneg %p3051_p7  ;;  %p2615_p10 = scmp.lt.u32.totalorder %s2613_s26, %s2608_s8 }
  0x5c   : > { %p2617_p6 = scmp.lt.u32.totalorder %s2608_s8, %s3043_s5 }
  0x5d   : > { %p2611_p0 = pnand %p2610_p12, %p2609_p8  ;;  %p2616_p1 = por %p2615_p10, %p2614_p4 }
  0x5f   : > { %p2612_p13 = pneg %p2611_p0  ;;  %p2618_p11 = por %p2617_p6, %p2616_p1 }
  0x61   : > { %p2619_p2 = pnand %p2618_p11, %p2612_p13 }
  0x63   : > { %2622 = shalt.err (!%p2619_p2)
}
  0x64   : > { %s2623_s30 = scalar_lea.vmem %s3045_s19, 256  ;;  %s2770_s12 = smov [#allocation6]  }
  0x65   : > { %p2624_p5 = scmp.ne.s32.totalorder %s3045_s19, %s2623_s30  ;;  %s2628_s24 = sshll.u32 %s2770_s12, 4  ;;  %s2629_s24 = int_to_ptr.vmem [resolvable:$false] %s2628_s24 }
  0x66   : > { %s2630_s27 = scalar_lea.vmem %s2629_s24, 512  ;;  %p2631_p3 = scmp.lt.s32.totalorder %s3045_s19, %s2629_s24 }
  0x67   : > { %p2626_p8 = pnand %p2624_p5, %p2610_p12  ;;  %p2632_p4 = scmp.lt.s32.totalorder %s2630_s27, %s2623_s30 }
  0x69   : > { %p2627_p0 = pneg %p2626_p8  ;;  %p2633_p10 = por %p2632_p4, %p2631_p3 }
  0x6b   : > { %p2634_p1 = pnand %p2633_p10, %p2627_p0 }
  0x6d   : > { %2637 = shalt.err (!%p2634_p1)
}
  0x6e   : > { %s2771_s7 = smov 128   ;;  %s2772_s4 = smov 8  }
  0x6f   : > { %s4153_s17 = smov 512   ;;  %344 = sbr.rel (%p2995_p9) target bundleno = 1231 (0x4cf), region = 52 }
  0x70   : > { %2418 = dma.hbm_to_vmem [thread:$0]  (!%p3051_p7), %s3043_s5, 256, %s3045_s19, %s3055_s0, %s4153_s17, %s2771_s7, %s2772_s4  }
  0x76   : > { %s3087_s8 = sand.u32 1, %s2740_s9   ;;  %p4154_p3 = scmp.ne.s32.totalorder %s4136_s25, 0 }
  0x77   : > { %s2347_s13 = sshll.u32 %s3087_s8, 5  ;;  %s347_s18 = scalar_lea.sflag [#allocation4], %s3087_s8 }
  0x78   : > { %s3091_s26 = scalar_lea.vmem [#allocation3], %s2347_s13 }
  0x79   : > { %2711 = dma.done.wait (%p4154_p3), %s347_s18, 512  }
  0x7a   : > { %2713 = vsyncadd (%p4154_p3), %s347_s18, 4294966784  ;;  %s355_s19 = sand.u32 1, %s2728_s28   ;;  %p4155_p9 = scmp.ne.s32.totalorder %s4150_s3, 0 }
  0x7b   : > { %s2348_s22 = sshll.u32 %s355_s19, 4  ;;  %s356_s5 = scalar_lea.sflag [#allocation7], %s355_s19 }
  0x7c   : > { %s359_s23 = scalar_lea.vmem [#allocation6], %s2348_s22 }
  0x7d   : > { %2715 = dma.done.wait (%p4155_p9), %s356_s5, 256  }
  0x7e   : > { %2717 = vsyncadd (%p4155_p9), %s356_s5, 4294967040  ;;  %vm403_vm0 = vcmask 1048384   ;;  %v4115_v0 = vmov 0.0   ;;  %s3104_s0 = scalar_lea.vmem [#allocation8], %s2347_s13  ;;  %p2350_p7 = scmp.ne.s32.totalorder %s2748_s11, 0 }
  0x7f   : > { %404 = vst.msk [vmem:[#allocation2] sm:$0xff] %vm403_vm0, %v4115_v0  ;;  %405 = vst.msk [vmem:[#allocation2 + $0x20] sm:$0xff] %vm403_vm0, %v4115_v0  ;;  %v2774_v1 = vmov (!%p2350_p7), 0.0  }
  0x80   : > { %409 = sbr.rel (%p2350_p7) target bundleno = 135 (0x87), region = 64  ;;  %410 = vst [vmem:[#allocation2 + $0x8] sm:$0xff] (!%p2350_p7), %v2774_v1  ;;  %411 = vst [vmem:[#allocation2 + $0x28] sm:$0xff] (!%p2350_p7), %v2774_v1 }
  0x87 PF: > { %p2351_p12 = scmp.le.s32.totalorder %s2748_s11, 0 }
  0x88   : > { %v416_v2 = vld [vmem:[%s359_s23] sm:$0xff] (!%p2351_p12)  ;;  %v417_v3 = vld [vmem:[%s359_s23 + $0x8] sm:$0xff] (!%p2351_p12) }
  0x89   : > { %415 = sbr.rel (%p2351_p12) target bundleno = 144 (0x90), region = 68  ;;  %418 = vst [vmem:[#allocation2 + $0x8] sm:$0xff] (!%p2351_p12), %v416_v2  ;;  %419 = vst [vmem:[#allocation2 + $0x28] sm:$0xff] (!%p2351_p12), %v417_v3 }
  0x90 PF: > { %s4156_s2 = sld [smem:[#allocation30_spill]]  ;;  %1633 = vmatprep.mubr.f32.mxu1 %v4115_v0  ;;  %1912 = vmatprep.mubr.f32.mxu0 %v4115_v0  ;;  %v2775_v5 = vmov 2   ;;  %v2776_v6 = vmov 1   ;;  %v2777_v8 = vmov 0   ;;  %s4157_s27 = sld [smem:[#allocation31_spill]]  ;;  %v2778_v10 = vmov 3  }
  0x91   : > { %2535 = vset.pattern.permute.xlu0 %v2775_v5  ;;  %2536 = vset.pattern.permute.xlu1 %v2776_v6  ;;  %v454_v12 = vld [vmem:[#allocation2] sm:$0xff]  ;;  %v3145_v17 = vld [vmem:[#allocation2 + $0x8] sm:$0xff]  ;;  %s2779_s13 = smov 1   ;;  %v3159_v23 = vld [vmem:[%s3091_s26 + $0x10] sm:$0xff]  ;;  %s2780_s18 = smov 2   ;;  %vm496_vm1 = vcmask 7168  }
  0x92   : > { %v3136_v13 = vld [vmem:[%s3091_s26] sm:$0xff]  ;;  %v3156_v22 = vld [vmem:[%s3091_s26 + $0x8] sm:$0xff]  ;;  %4159 = vst [vmem:[#allocation18_spill] sm:$0xff] %v3159_v23  ;;  %v3179_v30 = vld [vmem:[%s3091_s26 + $0x18] sm:$0xff]  ;;  %s2781_s19 = smov 3   ;;  %s2782_s22 = smov 4  }
  0x93   : > { %v455_v18 = vld [vmem:[#allocation2 + $0x20] sm:$0xff]  ;;  %v3169_v27 = vld [vmem:[#allocation2 + $0x28] sm:$0xff]  ;;  %s2783_s5 = smov 8   ;;  %s2784_s23 = smov 12   ;;  %vm555_vm2 = vcmask 15360   ;;  %vm614_vm3 = vcmask 23552  }
  0x94   : > { %s2785_s25 = smov 6   ;;  %vm881_vm4 = vcmask 31744   ;;  %vm932_vm5 = vcmask 48128   ;;  %vm1189_vm6 = vcmask 64512   ;;  %vm1240_vm7 = vcmask 97280   ;;  %s2786_s3 = smov 16  }
  0x95   : > { %s2787_s6 = smov 24   ;;  %s4180_s24 = sld [smem:[#allocation33_spill]]  ;;  %vm1471_vm8 = vcmask 130048   ;;  %vm1508_vm9 = vcmask 195584  }
  0x96   : > { %v428_v4 = vld [vmem:[%s4156_s2] sm:$0xff]  ;;  %v429_v7 = vld [vmem:[%s4156_s2 + $0x8] sm:$0xff]  ;;  %s4158_s7 = smov %s4157_s27  ;;  %s4184_s4 = sld [smem:[#allocation32_spill]] }
  0x97   : > { %457 = vperm.xlu0 %2535, %v428_v4   ;;  %516 = vperm.xlu1 %2536, %v428_v4   ;;  %v3121_v9 = vld [vmem:[%s4157_s27] sm:$0xff]  ;;  %v3127_v11 = vld [vmem:[%s4158_s7 + $0x8] sm:$0xff]  ;;  %s4187_s12 = sld [smem:[#allocation36_spill]]  ;;  %p4189_p6 = scmp.ne.s32.totalorder %s4137_s20, 0 }
  0x9b   : > { %461 = vperm.xlu0 %2535, %v429_v7   ;;  %520 = vperm.xlu1 %2536, %v429_v7  }
  0x9d   : > { %s4188_s17 = smov %s4187_s12 }
  0x9f   : > { %2537 = vset.pattern.permute.xlu0 %v2777_v8  ;;  %2538 = vset.pattern.permute.xlu1 %v2777_v8 }
  0xa0   : > { %575 = vperm.xlu0 %2537, %v428_v4   ;;  %579 = vperm.xlu1 %2538, %v429_v7  }
  0xa4   : > { %2539 = vset.pattern.permute.xlu1 %v2778_v10  ;;  %2540 = vset.pattern.permute.xlu0 %v2775_v5 }
  0xa5   : > { %440 = vperm.xlu1 %2539, %v428_v4   ;;  %648 = vperm.xlu0 %2540, %v3121_v9  }
  0xa9   : > { %2541 = vset.pattern.permute.xlu1 %v2775_v5  ;;  %2543 = vset.pattern.permute.xlu0 %v2776_v6 }
  0xaa   : > { %652 = vperm.xlu1 %2541, %v3127_v11   ;;  %696 = vperm.xlu0 %2543, %v3127_v11  }
  0xae   : > { %2542 = vset.pattern.permute.xlu1 %v2776_v6  ;;  %2544 = vset.pattern.permute.xlu0 %v2778_v10 }
  0xaf   : > { %692 = vperm.xlu1 %2542, %v3121_v9   ;;  %445 = vperm.xlu0 %2544, %v429_v7  }
  0xb3   : > { %2545 = vset.pattern.permute.xlu1 %v2777_v8 }
  0xb4   : > { %736 = vperm.xlu1 %2545, %v3121_v9  }
  0xb8   : > { %740 = vperm.xlu1 %2545, %v3127_v11  }
  0xbc   : > { %2546 = vset.pattern.permute.xlu1 %v2778_v10 }
 0x116   : > { %v3138_v14 = vpop.permute.xlu0 %457  ;;  %v3163_v24 = vpop.permute.xlu1 %516 }
 0x117   : > { %v3141_v15 = vmul.f32 %v3138_v14, %v454_v12  ;;  %v466_v16 = vmul.f32 %v3138_v14, %v3136_v13  ;;  %v465_v20 = vmul.f32 %v3138_v14, %v3145_v17  ;;  %v467_v25 = vmul.f32 %v3138_v14, %v3156_v22 }
 0x118   : > { %v3174_v28 = vmul.f32 %v3163_v24, %v454_v12  ;;  %v525_v31 = vmul.f32 %v3163_v24, %v3136_v13  ;;  %v524_v34 = vmul.f32 %v3163_v24, %v3145_v17  ;;  %v526_v37 = vmul.f32 %v3163_v24, %v3156_v22 }
 0x119   : > { %480 = vrot.lane.b32.xlu1 %v3141_v15, %s2779_s13  ;;  %484 = vrot.lane.b32.xlu0 %v466_v16, %s2779_s13 }
 0x11a   : > { %v3150_v19 = vpop.permute.xlu0 %461  ;;  %v3186_v32 = vpop.permute.xlu1 %520 }
 0x11b   : > { %v468_v21 = vmul.f32 %v3150_v19, %v455_v18  ;;  %v470_v26 = vmul.f32 %v3150_v19, %v3159_v23  ;;  %v469_v29 = vmul.f32 %v3150_v19, %v3169_v27  ;;  %v471_v33 = vmul.f32 %v3150_v19, %v3179_v30 }
 0x11c   : > { %v527_v35 = vmul.f32 %v3186_v32, %v455_v18  ;;  %v529_v38 = vmul.f32 %v3186_v32, %v3159_v23  ;;  %v528_v40 = vmul.f32 %v3186_v32, %v3169_v27  ;;  %v530_v43 = vmul.f32 %v3186_v32, %v3179_v30 }
 0x11d   : > { %482 = vrot.lane.b32.xlu1 %v465_v20, %s2779_s13  ;;  %488 = vrot.lane.b32.xlu0 %v468_v21, %s2779_s13 }
 0x11f   : > { %v3197_v36 = vpop.permute.xlu0 %575  ;;  %v3212_v42 = vpop.permute.xlu1 %579 }
 0x120   : > { %v582_v39 = vmul.f32 %v3197_v36, %v454_v12  ;;  %v584_v41 = vmul.f32 %v3197_v36, %v3136_v13  ;;  %v583_v44 = vmul.f32 %v3197_v36, %v3145_v17  ;;  %v586_v45 = vmul.f32 %v3212_v42, %v455_v18 }
 0x121   : > { %486 = vrot.lane.b32.xlu1 %v467_v25, %s2779_s13  ;;  %492 = vrot.lane.b32.xlu0 %v470_v26, %s2779_s13  ;;  %v588_v46 = vmul.f32 %v3212_v42, %v3159_v23  ;;  %v585_v47 = vmul.f32 %v3197_v36, %v3156_v22  ;;  %v587_v48 = vmul.f32 %v3212_v42, %v3169_v27 }
 0x122   : > { %v589_v49 = vmul.f32 %v3212_v42, %v3179_v30 }
 0x124   : > { %v3245_v50 = vpop.permute.xlu1 %440  ;;  %v3249_v51 = vpop.permute.xlu0 %648 }
 0x125   : > { %490 = vrot.lane.b32.xlu1 %v469_v29, %s2779_s13  ;;  %539 = vrot.lane.b32.xlu0 %v3174_v28, %s2780_s18  ;;  %4160 = vst [vmem:[#allocation19_spill] sm:$0xff] %v3245_v50  ;;  %v656_v52 = vmul.f32 %v3249_v51, %v3136_v13  ;;  %v655_v55 = vmul.f32 %v3249_v51, %v3145_v17 }
 0x126   : > { %v657_v56 = vmul.f32 %v3249_v51, %v3156_v22  ;;  %v448_v26 = vmul.f32 %v3245_v50, %v3145_v17 }
 0x129   : > { %494 = vrot.lane.b32.xlu1 %v471_v33, %s2779_s13  ;;  %543 = vrot.lane.b32.xlu0 %v525_v31, %s2780_s18  ;;  %v3255_v53 = vpop.permute.xlu1 %652  ;;  %v3281_v60 = vpop.permute.xlu0 %696 }
 0x12a   : > { %4161 = vst [vmem:[#allocation20_spill] sm:$0xff] %v3255_v53  ;;  %v659_v54 = vmul.f32 %v3255_v53, %v3159_v23  ;;  %v660_v57 = vmul.f32 %v3255_v53, %v3179_v30  ;;  %v658_v58 = vmul.f32 %v3255_v53, %v3169_v27 }
 0x12d   : > { %541 = vrot.lane.b32.xlu1 %v524_v34, %s2780_s18  ;;  %547 = vrot.lane.b32.xlu0 %v527_v35, %s2780_s18 }
 0x12e   : > { %v3279_v59 = vpop.permute.xlu1 %692  ;;  %v3285_v62 = vpop.permute.xlu0 %445 }
 0x131   : > { %545 = vrot.lane.b32.xlu1 %v526_v37, %s2780_s18  ;;  %551 = vrot.lane.b32.xlu0 %v529_v38, %s2780_s18 }
 0x133   : > { %v3283_v61 = vpop.permute.xlu1 %736 }
 0x135   : > { %549 = vrot.lane.b32.xlu1 %v528_v40, %s2780_s18  ;;  %598 = vrot.lane.b32.xlu0 %v582_v39, %s2781_s19 }
 0x137   : > { %v3287_v63 = vpop.permute.xlu1 %740 }
 0x139   : > { %553 = vrot.lane.b32.xlu1 %v530_v43, %s2780_s18  ;;  %602 = vrot.lane.b32.xlu0 %v584_v41, %s2781_s19 }
 0x13d   : > { %600 = vrot.lane.b32.xlu1 %v583_v44, %s2781_s19  ;;  %606 = vrot.lane.b32.xlu0 %v586_v45, %s2781_s19 }
 0x141   : > { %604 = vrot.lane.b32.xlu1 %v585_v47, %s2781_s19  ;;  %610 = vrot.lane.b32.xlu0 %v588_v46, %s2781_s19 }
 0x145   : > { %608 = vrot.lane.b32.xlu1 %v587_v48, %s2781_s19  ;;  %635 = vperm.xlu0 %2544, %v3121_v9  }
 0x149   : > { %612 = vrot.lane.b32.xlu1 %v589_v49, %s2781_s19  ;;  %815 = vrot.lane.b32.xlu0 %v3141_v15, %s2780_s18 }
 0x14a   : > { %2548 = vset.pattern.permute.xlu0 %v2777_v8 }
 0x14d   : > { %640 = vperm.xlu1 %2546, %v3127_v11   ;;  %823 = vrot.lane.b32.xlu0 %v468_v21, %s2780_s18 }
 0x151   : > { %1131 = vrot.lane.b32.xlu1 %v468_v21, %s2782_s22  ;;  %865 = vrot.lane.b32.xlu0 %v3174_v28, %s2782_s22 }
 0x152   : > { %2547 = vset.pattern.permute.xlu1 %v2777_v8 }
 0x155   : > { %1181 = vrot.lane.b32.xlu1 %v527_v35, %s2783_s5  ;;  %873 = vrot.lane.b32.xlu0 %v527_v35, %s2782_s22 }
 0x159   : > { %1232 = vrot.lane.b32.xlu1 %v586_v45, %s2784_s23  ;;  %916 = vrot.lane.b32.xlu0 %v582_v39, %s2785_s25 }
 0x15d   : > { %924 = vrot.lane.b32.xlu0 %v586_v45, %s2785_s25  ;;  %669 = vrot.lane.b32.xlu1 %v656_v52, %s2779_s13 }
 0x161   : > { %1123 = vrot.lane.b32.xlu0 %v3141_v15, %s2782_s22  ;;  %675 = vrot.lane.b32.xlu1 %v659_v54, %s2779_s13  ;;  %v451_v54 = vmul.f32 %v3285_v62, %v3169_v27 }
 0x165   : > { %1173 = vrot.lane.b32.xlu0 %v3174_v28, %s2783_s5  ;;  %667 = vrot.lane.b32.xlu1 %v655_v55, %s2779_s13  ;;  %v449_v28 = vmul.f32 %v3245_v50, %v3136_v13 }
 0x169   : > { %1224 = vrot.lane.b32.xlu0 %v582_v39, %s2784_s23  ;;  %v450_v39 = vmul.f32 %v3245_v50, %v3156_v22 }
 0x16d   : > { %671 = vrot.lane.b32.xlu0 %v657_v56, %s2779_s13 }
 0x171   : > { %677 = vrot.lane.b32.xlu0 %v660_v57, %s2779_s13  ;;  %v452_v57 = vmul.f32 %v3285_v62, %v3159_v23 }
 0x175   : > { %673 = vrot.lane.b32.xlu0 %v658_v58, %s2779_s13  ;;  %s2199_s13 = scalar_lea.sflag [#allocation5], %s3087_s8 }
 0x18b   : > { %v481_v1 = vpop.permute.xlu1 %480  ;;  %v485_v2 = vpop.permute.xlu0 %484 }
 0x18f   : > { %v483_v3 = vpop.permute.xlu1 %482  ;;  %v489_v4 = vpop.permute.xlu0 %488 }
 0x190   : > { %v497_v21 = vsel %vm496_vm1, %v481_v1, %v483_v3  ;;  %v498_v25 = vsel %vm496_vm1, %v483_v3, %v485_v2 }
 0x191   : > { %v509_v35 = vadd.f32 %v497_v21, %v448_v26  ;;  %v510_v37 = vadd.f32 %v498_v25, %v449_v28  ;;  %v453_v21 = vmul.f32 %v3285_v62, %v3179_v30 }
 0x193   : > { %v487_v5 = vpop.permute.xlu1 %486  ;;  %v493_v6 = vpop.permute.xlu0 %492 }
 0x194   : > { %v499_v38 = vsel %vm496_vm1, %v485_v2, %v487_v5 }
 0x195   : > { %v511_v48 = vadd.f32 %v499_v38, %v450_v39 }
 0x197   : > { %v491_v7 = vpop.permute.xlu1 %490  ;;  %v540_v8 = vpop.permute.xlu0 %539 }
 0x198   : > { %v500_v55 = vsel %vm496_vm1, %v489_v4, %v491_v7  ;;  %v501_v56 = vsel %vm496_vm1, %v491_v7, %v493_v6 }
 0x199   : > { %v512_v4 = vadd.f32 %v500_v55, %v451_v54  ;;  %v701_v55 = vmul.f32 %v3279_v59, %v3156_v22 }
 0x19b   : > { %v495_v9 = vpop.permute.xlu1 %494  ;;  %v544_v10 = vpop.permute.xlu0 %543 }
 0x19f   : > { %v542_v11 = vpop.permute.xlu1 %541  ;;  %v548_v12 = vpop.permute.xlu0 %547 }
 0x1a0   : > { %v556_v33 = vsel %vm555_vm2, %v540_v8, %v542_v11  ;;  %v557_v34 = vsel %vm555_vm2, %v542_v11, %v544_v10  ;;  %v513_v11 = vadd.f32 %v501_v56, %v452_v57  ;;  %v704_v57 = vmul.f32 %v3281_v60, %v3179_v30 }
 0x1a1   : > { %v568_v40 = vadd.f32 %v556_v33, %v509_v35  ;;  %v569_v41 = vadd.f32 %v557_v34, %v510_v37 }
 0x1a3   : > { %v546_v15 = vpop.permute.xlu1 %545  ;;  %v552_v16 = vpop.permute.xlu0 %551 }
 0x1a4   : > { %v558_v45 = vsel %vm555_vm2, %v544_v10, %v546_v15 }
 0x1a5   : > { %v570_v58 = vadd.f32 %v558_v45, %v511_v48 }
 0x1a7   : > { %v550_v18 = vpop.permute.xlu1 %549  ;;  %v599_v20 = vpop.permute.xlu0 %598 }
 0x1a8   : > { %v559_v5 = vsel %vm555_vm2, %v548_v12, %v550_v18  ;;  %v560_v8 = vsel %vm555_vm2, %v550_v18, %v552_v16 }
 0x1a9   : > { %v571_v25 = vadd.f32 %v559_v5, %v512_v4  ;;  %v572_v12 = vadd.f32 %v560_v8, %v513_v11  ;;  %v700_v4 = vmul.f32 %v3279_v59, %v3136_v13 }
 0x1ab   : > { %v554_v29 = vpop.permute.xlu1 %553  ;;  %v603_v31 = vpop.permute.xlu0 %602 }
 0x1ac   : > { %v561_v28 = vsel %vm555_vm2, %v552_v16, %v554_v29 }
 0x1af   : > { %v601_v43 = vpop.permute.xlu1 %600  ;;  %v607_v44 = vpop.permute.xlu0 %606 }
 0x1b0   : > { %v615_v46 = vsel %vm614_vm3, %v599_v20, %v601_v43  ;;  %v616_v47 = vsel %vm614_vm3, %v601_v43, %v603_v31  ;;  %v502_v20 = vsel %vm496_vm1, %v493_v6, %v495_v9 }
 0x1b1   : > { %v3303_v49 = vadd.f32 %v615_v46, %v568_v40  ;;  %v3305_v52 = vadd.f32 %v616_v47, %v569_v41  ;;  %v514_v34 = vadd.f32 %v502_v20, %v453_v21  ;;  %v703_v20 = vmul.f32 %v3281_v60, %v3159_v23 }
 0x1b3   : > { %v605_v1 = vpop.permute.xlu1 %604  ;;  %v800_v2 = vmul.f32 %v3303_v49, %v3138_v14  ;;  %v801_v3 = vmul.f32 %v3305_v52, %v3138_v14  ;;  %v611_v15 = vpop.permute.xlu0 %610  ;;  %v573_v6 = vadd.f32 %v561_v28, %v514_v34  ;;  %v851_v41 = vmul.f32 %v3305_v52, %v3163_v24 }
 0x1b4   : > { %v617_v10 = vsel %vm614_vm3, %v603_v31, %v605_v1  ;;  %v850_v43 = vmul.f32 %v3303_v49, %v3163_v24  ;;  %v902_v46 = vmul.f32 %v3305_v52, %v3197_v36  ;;  %v901_v56 = vmul.f32 %v3303_v49, %v3197_v36 }
 0x1b5   : > { %v3320_v7 = vadd.f32 %v617_v10, %v570_v58  ;;  %817 = vrot.lane.b32.xlu1 %v800_v2, %s2780_s18  ;;  %819 = vrot.lane.b32.xlu0 %v801_v3, %s2780_s18  ;;  %v702_v1 = vmul.f32 %v3281_v60, %v3169_v27  ;;  %v745_v3 = vmul.f32 %v3283_v61, %v3156_v22 }
 0x1b6   : > { %v748_v10 = vmul.f32 %v3287_v63, %v3179_v30 }
 0x1b7   : > { %v609_v26 = vpop.permute.xlu1 %608  ;;  %v802_v18 = vmul.f32 %v3320_v7, %v3138_v14  ;;  %v852_v45 = vmul.f32 %v3320_v7, %v3163_v24  ;;  %v903_v58 = vmul.f32 %v3320_v7, %v3197_v36  ;;  %v981_v11 = vmul.f32 %v3249_v51, %v3320_v7 }
 0x1b8   : > { %v618_v31 = vsel %vm614_vm3, %v607_v44, %v609_v26  ;;  %v619_v33 = vsel %vm614_vm3, %v609_v26, %v611_v15  ;;  %v1017_v28 = vmul.f32 %v3279_v59, %v3320_v7 }
 0x1b9   : > { %v3332_v35 = vadd.f32 %v618_v31, %v571_v25  ;;  %v3334_v37 = vadd.f32 %v619_v33, %v572_v12  ;;  %821 = vrot.lane.b32.xlu1 %v802_v18, %s2780_s18  ;;  %v699_v12 = vmul.f32 %v3279_v59, %v3145_v17  ;;  %v744_v18 = vmul.f32 %v3283_v61, %v3136_v13 }
 0x1ba   : > { %v747_v33 = vmul.f32 %v3287_v63, %v3159_v23 }
 0x1bb   : > { %v613_v9 = vpop.permute.xlu1 %612  ;;  %v804_v38 = vmul.f32 %v3332_v35, %v3150_v19  ;;  %v805_v39 = vmul.f32 %v3334_v37, %v3150_v19  ;;  %v855_v44 = vmul.f32 %v3334_v37, %v3186_v32  ;;  %v854_v47 = vmul.f32 %v3332_v35, %v3186_v32 }
 0x1bc   : > { %v620_v16 = vsel %vm614_vm3, %v611_v15, %v613_v9  ;;  %v906_v48 = vmul.f32 %v3334_v37, %v3212_v42  ;;  %v905_v2 = vmul.f32 %v3332_v35, %v3212_v42  ;;  %v982_v26 = vmul.f32 %v3255_v53, %v3332_v35 }
 0x1bd   : > { %v3342_v29 = vadd.f32 %v620_v16, %v573_v6  ;;  %825 = vrot.lane.b32.xlu1 %v804_v38, %s2780_s18  ;;  %827 = vrot.lane.b32.xlu0 %v805_v39, %s2780_s18  ;;  %v980_v6 = vmul.f32 %v3249_v51, %v3305_v52  ;;  %v983_v13 = vmul.f32 %v3255_v53, %v3334_v37 }
 0x1be   : > { %v979_v39 = vmul.f32 %v3249_v51, %v3303_v49 }
 0x1bf   : > { %v806_v40 = vmul.f32 %v3342_v29, %v3150_v19  ;;  %v856_v54 = vmul.f32 %v3342_v29, %v3186_v32  ;;  %v907_v8 = vmul.f32 %v3342_v29, %v3212_v42  ;;  %v984_v21 = vmul.f32 %v3255_v53, %v3342_v29 }
 0x1c1   : > { %829 = vrot.lane.b32.xlu1 %v806_v40, %s2780_s18  ;;  %869 = vrot.lane.b32.xlu0 %v851_v41, %s2782_s22  ;;  %v1016_v40 = vmul.f32 %v3279_v59, %v3305_v52 }
 0x1c4   : > { %v3394_v5 = vpop.permute.xlu0 %635 }
 0x1c5   : > { %867 = vrot.lane.b32.xlu1 %v850_v43, %s2782_s22  ;;  %877 = vrot.lane.b32.xlu0 %v855_v44, %s2782_s22 }
 0x1c8   : > { %v816_v15 = vpop.permute.xlu0 %815 }
 0x1c9   : > { %871 = vrot.lane.b32.xlu1 %v852_v45, %s2782_s22  ;;  %920 = vrot.lane.b32.xlu0 %v902_v46, %s2785_s25 }
 0x1cc   : > { %v3414_v25 = vpop.permute.xlu0 %823  ;;  %v3439_v38 = vpop.permute.xlu1 %640 }
 0x1cd   : > { %875 = vrot.lane.b32.xlu1 %v854_v47, %s2782_s22  ;;  %928 = vrot.lane.b32.xlu0 %v906_v48, %s2785_s25 }
 0x1d0   : > { %v866_v31 = vpop.permute.xlu0 %865  ;;  %v3448_v41 = vpop.permute.xlu1 %1131 }
 0x1d1   : > { %879 = vrot.lane.b32.xlu1 %v856_v54, %s2782_s22  ;;  %715 = vrot.lane.b32.xlu0 %v701_v55, %s2780_s18  ;;  %4162 = vst [vmem:[#allocation21_spill] sm:$0xff] %v3448_v41 }
 0x1d4   : > { %v3431_v34 = vpop.permute.xlu0 %873  ;;  %v3453_v44 = vpop.permute.xlu1 %1181 }
 0x1d5   : > { %918 = vrot.lane.b32.xlu1 %v901_v56, %s2785_s25  ;;  %721 = vrot.lane.b32.xlu0 %v704_v57, %s2780_s18  ;;  %4164 = vst [vmem:[#allocation23_spill] sm:$0xff] %v3453_v44 }
 0x1d8   : > { %v917_v9 = vpop.permute.xlu0 %916  ;;  %v3457_v46 = vpop.permute.xlu1 %1232 }
 0x1d9   : > { %922 = vrot.lane.b32.xlu1 %v903_v58, %s2785_s25  ;;  %717 = vrot.lane.b32.xlu0 %v702_v1, %s2780_s18  ;;  %4166 = vst [vmem:[#allocation25_spill] sm:$0xff] %v3457_v46 }
 0x1dc   : > { %v3444_v16 = vpop.permute.xlu0 %924  ;;  %v3461_v48 = vpop.permute.xlu1 %669 }
 0x1dd   : > { %926 = vrot.lane.b32.xlu1 %v905_v2, %s2785_s25  ;;  %759 = vrot.lane.b32.xlu0 %v745_v3, %s2781_s19 }
 0x1e0   : > { %v3451_v43 = vpop.permute.xlu0 %1123  ;;  %v3465_v55 = vpop.permute.xlu1 %675 }
 0x1e1   : > { %930 = vrot.lane.b32.xlu1 %v907_v8, %s2785_s25  ;;  %765 = vrot.lane.b32.xlu0 %v748_v10, %s2781_s19  ;;  %4163 = vst [vmem:[#allocation22_spill] sm:$0xff] %v3451_v43 }
 0x1e4   : > { %v3455_v45 = vpop.permute.xlu0 %1173  ;;  %v3469_v57 = vpop.permute.xlu1 %667 }
 0x1e5   : > { %713 = vrot.lane.b32.xlu1 %v700_v4, %s2780_s18  ;;  %995 = vrot.lane.b32.xlu0 %v981_v11, %s2780_s18  ;;  %4165 = vst [vmem:[#allocation24_spill] sm:$0xff] %v3455_v45  ;;  %4168 = vst [vmem:[#allocation27_spill] sm:$0xff] %v3469_v57 }
 0x1e8   : > { %v3459_v47 = vpop.permute.xlu0 %1224 }
 0x1e9   : > { %719 = vrot.lane.b32.xlu1 %v703_v20, %s2780_s18  ;;  %1001 = vrot.lane.b32.xlu0 %v984_v21, %s2780_s18  ;;  %4167 = vst [vmem:[#allocation26_spill] sm:$0xff] %v3459_v47 }
 0x1ec   : > { %v3463_v54 = vpop.permute.xlu0 %671 }
 0x1ed   : > { %711 = vrot.lane.b32.xlu1 %v699_v12, %s2780_s18  ;;  %997 = vrot.lane.b32.xlu0 %v982_v26, %s2780_s18 }
 0x1f0   : > { %v3467_v56 = vpop.permute.xlu0 %677 }
 0x1f1   : > { %757 = vrot.lane.b32.xlu1 %v744_v18, %s2781_s19  ;;  %1031 = vrot.lane.b32.xlu0 %v1017_v28, %s2782_s22 }
 0x1f4   : > { %v3471_v58 = vpop.permute.xlu0 %673 }
 0x1f5   : > { %763 = vrot.lane.b32.xlu1 %v747_v33, %s2781_s19  ;;  %4169 = vst [vmem:[#allocation28_spill] sm:$0xff] %v3471_v58 }
 0x1f9   : > { %993 = vrot.lane.b32.xlu1 %v980_v6, %s2780_s18 }
 0x1fd   : > { %999 = vrot.lane.b32.xlu1 %v983_v13, %s2780_s18  ;;  %v785_v13 = vmul.f32 %v3303_v49, %v3245_v50 }
 0x201   : > { %991 = vrot.lane.b32.xlu1 %v979_v39, %s2780_s18  ;;  %v786_v39 = vmul.f32 %v3305_v52, %v3245_v50  ;;  %s4181_s18 = sld [smem:[#allocation34_spill]] }
 0x205   : > { %1029 = vrot.lane.b32.xlu1 %v1016_v40, %s2782_s22 }
 0x227   : > { %v818_v1 = vpop.permute.xlu1 %817  ;;  %v820_v2 = vpop.permute.xlu0 %819 }
 0x228   : > { %v831_v33 = vsel %vm555_vm2, %v816_v15, %v818_v1  ;;  %v832_v6 = vsel %vm555_vm2, %v818_v1, %v820_v2  ;;  %v787_v15 = vmul.f32 %v3320_v7, %v3245_v50 }
 0x229   : > { %v843_v58 = vadd.f32 %v831_v33, %v785_v13  ;;  %v844_v46 = vadd.f32 %v832_v6, %v786_v39 }
 0x22b   : > { %v822_v3 = vpop.permute.xlu1 %821 }
 0x22c   : > { %v833_v44 = vsel %vm555_vm2, %v820_v2, %v822_v3  ;;  %v788_v2 = vmul.f32 %v3332_v35, %v3285_v62 }
 0x22d   : > { %v845_v53 = vadd.f32 %v833_v44, %v787_v15 }
 0x22f   : > { %v826_v8 = vpop.permute.xlu1 %825  ;;  %v828_v10 = vpop.permute.xlu0 %827 }
 0x230   : > { %v834_v3 = vsel %vm555_vm2, %v3414_v25, %v826_v8 }
 0x233   : > { %v830_v4 = vpop.permute.xlu1 %829  ;;  %v870_v11 = vpop.permute.xlu0 %869 }
 0x237   : > { %v868_v20 = vpop.permute.xlu1 %867  ;;  %v878_v21 = vpop.permute.xlu0 %877 }
 0x238   : > { %v882_v0 = vsel %vm881_vm4, %v866_v31, %v868_v20  ;;  %v883_v57 = vsel %vm881_vm4, %v868_v20, %v870_v11 }
 0x239   : > { %v894_v1 = vadd.f32 %v882_v0, %v843_v58  ;;  %v895_v41 = vadd.f32 %v883_v57, %v844_v46  ;;  %v835_v0 = vsel %vm555_vm2, %v826_v8, %v828_v10  ;;  %v789_v46 = vmul.f32 %v3334_v37, %v3285_v62 }
 0x23a   : > { %v846_v8 = vadd.f32 %v834_v3, %v788_v2 }
 0x23b   : > { %v872_v12 = vpop.permute.xlu1 %871  ;;  %v921_v26 = vpop.permute.xlu0 %920 }
 0x23c   : > { %v884_v45 = vsel %vm881_vm4, %v870_v11, %v872_v12  ;;  %v847_v11 = vadd.f32 %v835_v0, %v789_v46 }
 0x23d   : > { %v896_v57 = vadd.f32 %v884_v45, %v845_v53  ;;  %v836_v53 = vsel %vm555_vm2, %v828_v10, %v830_v4  ;;  %v790_v45 = vmul.f32 %v3342_v29, %v3285_v62 }
 0x23f   : > { %v876_v18 = vpop.permute.xlu1 %875  ;;  %v929_v28 = vpop.permute.xlu0 %928 }
 0x240   : > { %v885_v44 = vsel %vm881_vm4, %v3431_v34, %v876_v18 }
 0x241   : > { %v897_v6 = vadd.f32 %v885_v44, %v846_v8 }
 0x243   : > { %v880_v40 = vpop.permute.xlu1 %879  ;;  %v716_v23 = vpop.permute.xlu0 %715 }
 0x247   : > { %v919_v47 = vpop.permute.xlu1 %918 }
 0x248   : > { %v933_v43 = vsel %vm932_vm5, %v917_v9, %v919_v47  ;;  %v934_v31 = vsel %vm932_vm5, %v919_v47, %v921_v26  ;;  %v722_v9 = vpop.permute.xlu0 %721  ;;  %v886_v47 = vsel %vm881_vm4, %v876_v18, %v878_v21 }
 0x249   : > { %v3487_v20 = vadd.f32 %v933_v43, %v894_v1  ;;  %v3489_v33 = vadd.f32 %v934_v31, %v895_v41  ;;  %v898_v13 = vadd.f32 %v886_v47, %v847_v11  ;;  %v848_v31 = vadd.f32 %v836_v53, %v790_v45 }
 0x24b   : > { %v923_v58 = vpop.permute.xlu1 %922  ;;  %v1108_v43 = vmul.f32 %v3487_v20, %v3138_v14  ;;  %v1109_v41 = vmul.f32 %v3489_v33, %v3138_v14 }
 0x24c   : > { %v935_v25 = vsel %vm932_vm5, %v921_v26, %v923_v58  ;;  %v887_v26 = vsel %vm881_vm4, %v878_v21, %v880_v40  ;;  %v718_v10 = vpop.permute.xlu0 %717 }
 0x24d   : > { %v3506_v12 = vadd.f32 %v935_v25, %v896_v57  ;;  %1125 = vrot.lane.b32.xlu0 %v1108_v43, %s2782_s22  ;;  %1127 = vrot.lane.b32.xlu1 %v1109_v41, %s2782_s22  ;;  %v899_v3 = vadd.f32 %v887_v26, %v848_v31  ;;  %v1158_v41 = vmul.f32 %v3487_v20, %v3163_v24 }
 0x24e   : > { %v1159_v25 = vmul.f32 %v3489_v33, %v3163_v24 }
 0x24f   : > { %v927_v34 = vpop.permute.xlu1 %926  ;;  %v1110_v18 = vmul.f32 %v3506_v12, %v3138_v14  ;;  %v952_v1 = vmul.f32 0.5, %v3506_v12  ;;  %v1160_v8 = vmul.f32 %v3506_v12, %v3163_v24 }
 0x250   : > { %v936_v39 = vsel %vm932_vm5, %v3444_v16, %v927_v34  ;;  %v937_v15 = vsel %vm932_vm5, %v927_v34, %v929_v28  ;;  %v760_v57 = vpop.permute.xlu0 %759 }
 0x251   : > { %v3520_v4 = vadd.f32 %v936_v39, %v897_v6  ;;  %v3522_v2 = vadd.f32 %v937_v15, %v898_v13  ;;  %1129 = vrot.lane.b32.xlu0 %v1110_v18, %s2782_s22  ;;  %2549 = vtanh.f32 %v952_v1  ;;  %v680_v6 = vsel %vm496_vm1, %v3461_v48, %v3463_v54 }
 0x252   : > { %v644_v13 = vmul.f32 %v3394_v5, %v3156_v22  ;;  %v646_v15 = vmul.f32 %v3439_v38, %v3179_v30  ;;  %v682_v22 = vsel %vm496_vm1, %v3465_v55, %v3467_v56  ;;  %v1209_v30 = vmul.f32 %v3487_v20, %v3197_v36 }
 0x253   : > { %v931_v0 = vpop.permute.xlu1 %930  ;;  %v1112_v21 = vmul.f32 %v3520_v4, %v3150_v19  ;;  %v1113_v16 = vmul.f32 %v3522_v2, %v3150_v19  ;;  %v1162_v18 = vmul.f32 %v3520_v4, %v3186_v32 }
 0x254   : > { %v938_v40 = vsel %vm932_vm5, %v929_v28, %v931_v0  ;;  %v766_v45 = vpop.permute.xlu0 %765  ;;  %v688_v39 = vadd.f32 %v680_v6, %v644_v13  ;;  %v976_v6 = vmul.f32 %v3394_v5, %v3320_v7 }
 0x255   : > { %v3530_v46 = vadd.f32 %v938_v40, %v899_v3  ;;  %1133 = vrot.lane.b32.xlu1 %v1112_v21, %s2782_s22  ;;  %1135 = vrot.lane.b32.xlu0 %v1113_v16, %s2782_s22  ;;  %v690_v16 = vadd.f32 %v682_v22, %v646_v15  ;;  %v977_v15 = vmul.f32 %v3439_v38, %v3334_v37 }
 0x257   : > { %v714_v58 = vpop.permute.xlu1 %713  ;;  %v1114_v43 = vmul.f32 %v3530_v46, %v3150_v19  ;;  %v954_v44 = vmul.f32 0.5, %v3530_v46  ;;  %v1164_v0 = vmul.f32 %v3530_v46, %v3186_v32 }
 0x258   : > { %v724_v47 = vsel %vm555_vm2, %v714_v58, %v716_v23 }
 0x259   : > { %1137 = vrot.lane.b32.xlu1 %v1114_v43, %s2782_s22  ;;  %1175 = vrot.lane.b32.xlu0 %v1158_v41, %s2783_s5  ;;  %2551 = vtanh.f32 %v954_v44  ;;  %v732_v31 = vadd.f32 %v724_v47, %v688_v39  ;;  %v1210_v47 = vmul.f32 %v3489_v33, %v3197_v36 }
 0x25b   : > { %v720_v28 = vpop.permute.xlu1 %719  ;;  %v2550_v23 = vpop.eup %2549 }
 0x25c   : > { %v3547_v11 = vsel %vm555_vm2, %v718_v10, %v720_v28  ;;  %v726_v53 = vsel %vm555_vm2, %v720_v28, %v722_v9  ;;  %v1163_v9 = vmul.f32 %v3522_v2, %v3186_v32  ;;  %v960_v1 = vmul.f32 0.5, %v2550_v23  ;;  %v996_v10 = vpop.permute.xlu0 %995 }
 0x25d   : > { %1177 = vrot.lane.b32.xlu1 %v1159_v25, %s2783_s5  ;;  %1179 = vrot.lane.b32.xlu0 %v1160_v8, %s2783_s5  ;;  %v734_v56 = vadd.f32 %v726_v53, %v690_v16  ;;  %v1211_v28 = vmul.f32 %v3506_v12, %v3197_v36  ;;  %v975_v16 = vmul.f32 %v3394_v5, %v3305_v52 }
 0x25f   : > { %v712_v34 = vpop.permute.xlu1 %711 }
 0x260   : > { %v3562_v26 = vsel %vm555_vm2, %v712_v34, %v714_v58  ;;  %v964_v58 = vadd.f32 0.5, %v960_v1  ;;  %v1002_v25 = vpop.permute.xlu0 %1001  ;;  %v1213_v34 = vmul.f32 %v3520_v4, %v3212_v42  ;;  %v978_v1 = vmul.f32 %v3439_v38, %v3342_v29 }
 0x261   : > { %1183 = vrot.lane.b32.xlu1 %v1162_v18, %s2783_s5  ;;  %1185 = vrot.lane.b32.xlu0 %v1163_v9, %s2783_s5  ;;  %v1214_v18 = vmul.f32 %v3522_v2, %v3212_v42 }
 0x263   : > { %v2552_v54 = vpop.eup %2551  ;;  %v3571_v3 = vpop.permute.xlu1 %757 }
 0x264   : > { %v768_v21 = vsel %vm614_vm3, %v3571_v3, %v760_v57  ;;  %v962_v43 = vmul.f32 0.5, %v2552_v54  ;;  %v998_v39 = vpop.permute.xlu0 %997  ;;  %v1215_v54 = vmul.f32 %v3530_v46, %v3212_v42 }
 0x265   : > { %v776_v40 = vadd.f32 %v768_v21, %v732_v31  ;;  %1187 = vrot.lane.b32.xlu1 %v1164_v0, %s2783_s5  ;;  %1226 = vrot.lane.b32.xlu0 %v1209_v30, %s2784_s23  ;;  %v1020_v31 = vmul.f32 %v3281_v60, %v3342_v29 }
 0x266   : > { %v966_v23 = vadd.f32 0.5, %v962_v43  ;;  %v746_v43 = vmul.f32 %v3287_v63, %v3169_v27  ;;  %v1015_v27 = vmul.f32 %v3279_v59, %v3303_v49 }
 0x267   : > { %v3581_v41 = vmul.f32 %v964_v58, %v776_v40  ;;  %v3583_v44 = vpop.permute.xlu1 %763  ;;  %v1019_v58 = vmul.f32 %v3281_v60, %v3334_v37 }
 0x268   : > { %v770_v57 = vsel %vm614_vm3, %v3583_v44, %v766_v45 }
 0x269   : > { %v778_v8 = vadd.f32 %v770_v57, %v734_v56  ;;  %1228 = vrot.lane.b32.xlu1 %v1210_v47, %s2784_s23  ;;  %1230 = vrot.lane.b32.xlu0 %v1211_v28, %s2784_s23  ;;  %v743_v28 = vmul.f32 %v3283_v61, %v3145_v17  ;;  %v1018_v57 = vmul.f32 %v3281_v60, %v3332_v35 }
 0x26a   : > { %v1052_v17 = vmul.f32 %v3283_v61, %v3305_v52  ;;  %v1288_v52 = vmul.f32 %v3489_v33, %v3249_v51 }
 0x26b   : > { %v3593_v53 = vmul.f32 %v966_v23, %v778_v8  ;;  %v994_v13 = vpop.permute.xlu1 %993  ;;  %v1056_v8 = vmul.f32 %v3287_v63, %v3342_v29  ;;  %v1055_v23 = vmul.f32 %v3287_v63, %v3334_v37 }
 0x26c   : > { %v1004_v45 = vsel %vm555_vm2, %v994_v13, %v996_v10 }
 0x26d   : > { %v3602_v9 = vadd.f32 %v1004_v45, %v976_v6  ;;  %1234 = vrot.lane.b32.xlu1 %v1213_v34, %s2784_s23  ;;  %1236 = vrot.lane.b32.xlu0 %v1214_v18, %s2784_s23  ;;  %v4170_v6 = vld [vmem:[#allocation20_spill] sm:$0xff]  ;;  %v1287_v34 = vmul.f32 %v3487_v20, %v3249_v51  ;;  %v1325_v18 = vmul.f32 %v3506_v12, %v3279_v59 }
 0x26e   : > { %v1292_v29 = vmul.f32 %v3530_v46, %v4170_v6  ;;  %v1291_v37 = vmul.f32 %v3522_v2, %v4170_v6  ;;  %v1324_v45 = vmul.f32 %v3489_v33, %v3279_v59 }
 0x26f   : > { %v1000_v22 = vpop.permute.xlu1 %999 }
 0x270   : > { %v1005_v10 = vsel %vm555_vm2, %v998_v39, %v1000_v22  ;;  %v1006_v0 = vsel %vm555_vm2, %v1000_v22, %v1002_v25  ;;  %v1053_v25 = vmul.f32 %v3283_v61, %v3320_v7  ;;  %v1289_v7 = vmul.f32 %v3506_v12, %v3249_v51 }
 0x271   : > { %v3616_v30 = vadd.f32 %v1005_v10, %v977_v15  ;;  %v3618_v21 = vadd.f32 %v1006_v0, %v978_v1  ;;  %1238 = vrot.lane.b32.xlu1 %v1215_v54, %s2784_s23  ;;  %1037 = vrot.lane.b32.xlu0 %v1020_v31, %s2782_s22  ;;  %v1328_v39 = vmul.f32 %v3530_v46, %v3281_v60  ;;  %v3684_v15 = vpop.permute.xlu0 %1031 }
 0x272   : > { %v1327_v51 = vmul.f32 %v3522_v2, %v3281_v60 }
 0x273   : > { %v992_v40 = vpop.permute.xlu1 %991 }
 0x274   : > { %v1003_v56 = vsel %vm555_vm2, %v992_v40, %v994_v13  ;;  %v1290_v13 = vmul.f32 %v3520_v4, %v4170_v6 }
 0x275   : > { %v3629_v47 = vadd.f32 %v1003_v56, %v975_v16  ;;  %1035 = vrot.lane.b32.xlu1 %v1019_v58, %s2782_s22  ;;  %761 = vrot.lane.b32.xlu0 %v746_v43, %s2781_s19  ;;  %v4171_v56 = vld [vmem:[#allocation22_spill] sm:$0xff] }
 0x277   : > { %v3686_v1 = vpop.permute.xlu1 %1029 }
 0x279   : > { %755 = vrot.lane.b32.xlu1 %v743_v28, %s2781_s19  ;;  %1033 = vrot.lane.b32.xlu0 %v1018_v57, %s2782_s22  ;;  %v1093_v57 = vmul.f32 %v3487_v20, %v3245_v50  ;;  %s2353_s19 = sshll.u32 %s2748_s11, 1 }
 0x27d   : > { %1027 = vrot.lane.b32.xlu1 %v1015_v27, %s2782_s22  ;;  %1067 = vrot.lane.b32.xlu0 %v1053_v25, %s2785_s25 }
 0x281   : > { %1065 = vrot.lane.b32.xlu1 %v1052_v17, %s2785_s25  ;;  %1073 = vrot.lane.b32.xlu0 %v1056_v8, %s2785_s25  ;;  %v4172_v17 = vld [vmem:[#allocation24_spill] sm:$0xff] }
 0x285   : > { %1071 = vrot.lane.b32.xlu1 %v1055_v23, %s2785_s25  ;;  %1303 = vrot.lane.b32.xlu0 %v1289_v7, %s2782_s22  ;;  %v953_v23 = vmul.f32 0.5, %v3522_v2 }
 0x287   : > { %2553 = vtanh.f32 %v953_v23 }
 0x289   : > { %1301 = vrot.lane.b32.xlu1 %v1288_v52, %s2782_s22  ;;  %1309 = vrot.lane.b32.xlu0 %v1292_v29, %s2782_s22  ;;  %v951_v29 = vmul.f32 0.5, %v3489_v33 }
 0x28b   : > { %2555 = vtanh.f32 %v951_v29 }
 0x28d   : > { %1307 = vrot.lane.b32.xlu1 %v1291_v37, %s2782_s22  ;;  %1305 = vrot.lane.b32.xlu0 %v1290_v13, %s2782_s22  ;;  %v1094_v37 = vmul.f32 %v3489_v33, %v3245_v50  ;;  %v1095_v13 = vmul.f32 %v3506_v12, %v3245_v50 }
 0x291   : > { %1299 = vrot.lane.b32.xlu1 %v1287_v34, %s2782_s22  ;;  %1339 = vrot.lane.b32.xlu0 %v1325_v18, %s2783_s5 }
 0x295   : > { %1337 = vrot.lane.b32.xlu1 %v1324_v45, %s2783_s5  ;;  %1345 = vrot.lane.b32.xlu0 %v1328_v39, %s2783_s5 }
 0x299   : > { %1343 = vrot.lane.b32.xlu1 %v1327_v51, %s2783_s5 }
 0x2bf   : > { %v1126_v22 = vpop.permute.xlu0 %1125  ;;  %v1128_v54 = vpop.permute.xlu1 %1127 }
 0x2c0   : > { %v1139_v28 = vsel %vm881_vm4, %v4171_v56, %v1126_v22  ;;  %v1140_v52 = vsel %vm881_vm4, %v1126_v22, %v1128_v54  ;;  %v4173_v56 = vld [vmem:[#allocation26_spill] sm:$0xff] }
 0x2c1   : > { %v1151_v7 = vadd.f32 %v1139_v28, %v1093_v57  ;;  %v4174_v57 = vld [vmem:[#allocation21_spill] sm:$0xff] }
 0x2c3   : > { %v1130_v31 = vpop.permute.xlu0 %1129 }
 0x2c4   : > { %v1141_v6 = vsel %vm881_vm4, %v1128_v54, %v1130_v31  ;;  %v1152_v54 = vadd.f32 %v1140_v52, %v1094_v37  ;;  %v4175_v52 = vld [vmem:[#allocation23_spill] sm:$0xff] }
 0x2c5   : > { %v1153_v31 = vadd.f32 %v1141_v6, %v1095_v13 }
 0x2c7   : > { %v1134_v10 = vpop.permute.xlu1 %1133  ;;  %v1136_v0 = vpop.permute.xlu0 %1135 }
 0x2c8   : > { %v1143_v50 = vsel %vm881_vm4, %v1134_v10, %v1136_v0 }
 0x2cb   : > { %v1138_v16 = vpop.permute.xlu1 %1137  ;;  %v1176_v40 = vpop.permute.xlu0 %1175 }
 0x2cc   : > { %v1190_v8 = vsel %vm1189_vm6, %v4172_v17, %v1176_v40  ;;  %v1142_v17 = vsel %vm881_vm4, %v4174_v57, %v1134_v10 }
 0x2cd   : > { %v1202_v34 = vadd.f32 %v1190_v8, %v1151_v7  ;;  %v1096_v8 = vmul.f32 %v3520_v4, %v3285_v62 }
 0x2cf   : > { %v1178_v58 = vpop.permute.xlu1 %1177  ;;  %v1180_v43 = vpop.permute.xlu0 %1179  ;;  %v1154_v13 = vadd.f32 %v1142_v17, %v1096_v8 }
 0x2d0   : > { %v1191_v39 = vsel %vm1189_vm6, %v1176_v40, %v1178_v58  ;;  %v1192_v51 = vsel %vm1189_vm6, %v1178_v58, %v1180_v43  ;;  %v1097_v40 = vmul.f32 %v3522_v2, %v3285_v62 }
 0x2d1   : > { %v1203_v58 = vadd.f32 %v1191_v39, %v1152_v54  ;;  %v1204_v43 = vadd.f32 %v1192_v51, %v1153_v31  ;;  %v4176_v39 = vld [vmem:[#allocation18_spill] sm:$0xff]  ;;  %v1098_v54 = vmul.f32 %v3530_v46, %v3285_v62  ;;  %v1144_v31 = vsel %vm881_vm4, %v1136_v0, %v1138_v16 }
 0x2d2   : > { %v645_v51 = vmul.f32 %v3439_v38, %v4176_v39 }
 0x2d3   : > { %v1184_v27 = vpop.permute.xlu1 %1183  ;;  %v1186_v25 = vpop.permute.xlu0 %1185  ;;  %v1156_v0 = vadd.f32 %v1144_v31, %v1098_v54  ;;  %v4179_v54 = vld [vmem:[#allocation27_spill] sm:$0xff] }
 0x2d4   : > { %v1193_v6 = vsel %vm1189_vm6, %v4175_v52, %v1184_v27  ;;  %v1194_v37 = vsel %vm1189_vm6, %v1184_v27, %v1186_v25  ;;  %v679_v31 = vsel %vm496_vm1, %v4179_v54, %v3461_v48 }
 0x2d5   : > { %v1205_v57 = vadd.f32 %v1193_v6, %v1154_v13  ;;  %v2554_v6 = vpop.eup %2553 }
 0x2d7   : > { %v1188_v18 = vpop.permute.xlu1 %1187  ;;  %v1227_v45 = vpop.permute.xlu0 %1226 }
 0x2d8   : > { %v1241_v22 = vsel %vm1240_vm7, %v4173_v56, %v1227_v45  ;;  %v1195_v8 = vsel %vm1189_vm6, %v1186_v25, %v1188_v18  ;;  %v4178_v25 = vld [vmem:[#allocation28_spill] sm:$0xff] }
 0x2d9   : > { %v3706_v28 = vadd.f32 %v1241_v22, %v1202_v34  ;;  %v1155_v34 = vadd.f32 %v1143_v50, %v1097_v40  ;;  %v681_v18 = vsel %vm496_vm1, %v4178_v25, %v3465_v55  ;;  %v961_v55 = vmul.f32 0.5, %v2554_v6 }
 0x2db   : > { %1395 = vst [vmem:[#allocation2 + $0x8] sm:$0xff] %v3706_v28  ;;  %v1229_v23 = vpop.permute.xlu1 %1228  ;;  %v1231_v7 = vpop.permute.xlu0 %1230  ;;  %v1206_v27 = vadd.f32 %v1194_v37, %v1155_v34  ;;  %v1207_v37 = vadd.f32 %v1195_v8, %v1156_v0  ;;  %v1411_v48 = vmul.f32 %v3706_v28, %v3138_v14  ;;  %v965_v6 = vadd.f32 0.5, %v961_v55 }
 0x2dc   : > { %v1242_v10 = vsel %vm1240_vm7, %v1227_v45, %v1229_v23  ;;  %v1243_v29 = vsel %vm1240_vm7, %v1229_v23, %v1231_v7  ;;  %v2556_v34 = vpop.eup %2555 }
 0x2dd   : > { %v3721_v56 = vadd.f32 %v1242_v10, %v1203_v58  ;;  %v3723_v22 = vadd.f32 %v1243_v29, %v1204_v43  ;;  %v4177_v58 = vld [vmem:[#allocation25_spill] sm:$0xff]  ;;  %v959_v0 = vmul.f32 0.5, %v2556_v34 }
 0x2df   : > { %v1235_v52 = vpop.permute.xlu1 %1234  ;;  %v1237_v45 = vpop.permute.xlu0 %1236  ;;  %v1412_v17 = vmul.f32 %v3721_v56, %v3138_v14  ;;  %v1413_v50 = vmul.f32 %v3723_v22, %v3138_v14  ;;  %v1260_v40 = vmul.f32 0.5, %v3723_v22  ;;  %v963_v34 = vadd.f32 0.5, %v959_v0 }
 0x2e0   : > { %v1244_v43 = vsel %vm1240_vm7, %v4177_v58, %v1235_v52  ;;  %v1245_v23 = vsel %vm1240_vm7, %v1235_v52, %v1237_v45  ;;  %v2577_v52 = vld [vmem:[%s3091_s26] sm:$0xff] }
 0x2e1   : > { %v3739_v16 = vadd.f32 %v1244_v43, %v1205_v57  ;;  %v3741_v7 = vadd.f32 %v1245_v23, %v1206_v27  ;;  %1425 = vrot.lane.b32.xlu0 %v1412_v17, %s2783_s5  ;;  %1427 = vrot.lane.b32.xlu1 %v1413_v50, %s2783_s5  ;;  %2557 = vtanh.f32 %v1260_v40  ;;  %v689_v57 = vadd.f32 %v681_v18, %v645_v51 }
 0x2e2   : > { %v643_v17 = vmul.f32 %v2577_v52, %v3394_v5 }
 0x2e3   : > { %1398 = vst [vmem:[#allocation2 + $0x28] sm:$0xff] %v3739_v16  ;;  %v1239_v10 = vpop.permute.xlu1 %1238  ;;  %v1038_v29 = vpop.permute.xlu0 %1037  ;;  %v1415_v13 = vmul.f32 %v3741_v7, %v3150_v19  ;;  %v733_v50 = vadd.f32 %v3547_v11, %v689_v57  ;;  %v1451_v55 = vmul.f32 %v3741_v7, %v3186_v32 }
 0x2e4   : > { %v1246_v39 = vsel %vm1240_vm7, %v1237_v45, %v1239_v10  ;;  %v687_v51 = vadd.f32 %v679_v31, %v643_v17 }
 0x2e5   : > { %v3755_v27 = vadd.f32 %v1246_v39, %v1207_v37  ;;  %1431 = vrot.lane.b32.xlu0 %v1415_v13, %s2783_s5 }
 0x2e6   : > { %v731_v18 = vadd.f32 %v3562_v26, %v687_v51 }
 0x2e7   : > { %v1262_v8 = vmul.f32 0.5, %v3755_v27  ;;  %v1036_v40 = vpop.permute.xlu1 %1035  ;;  %v762_v58 = vpop.permute.xlu0 %761  ;;  %v1416_v45 = vmul.f32 %v3755_v27, %v3150_v19 }
 0x2e8   : > { %v1042_v43 = vsel %vm881_vm4, %v1036_v40, %v1038_v29  ;;  %v769_v23 = vsel %vm614_vm3, %v762_v58, %v3583_v44  ;;  %v1414_v29 = vmul.f32 %v3739_v16, %v3150_v19  ;;  %v1448_v44 = vmul.f32 %v3721_v56, %v3163_v24 }
 0x2e9   : > { %2559 = vtanh.f32 %v1262_v8  ;;  %v1050_v11 = vadd.f32 %v1042_v43, %v3618_v21  ;;  %v777_v25 = vadd.f32 %v769_v23, %v733_v50  ;;  %1433 = vrot.lane.b32.xlu1 %v1416_v45, %s2783_s5  ;;  %1423 = vrot.lane.b32.xlu0 %v1411_v48, %s2783_s5 }
 0x2eb   : > { %v3773_v37 = vmul.f32 %v965_v6, %v777_v25  ;;  %v756_v14 = vpop.permute.xlu1 %755  ;;  %v1034_v10 = vpop.permute.xlu0 %1033  ;;  %v1450_v25 = vmul.f32 %v3739_v16, %v3186_v32 }
 0x2ec   : > { %v767_v21 = vsel %vm614_vm3, %v756_v14, %v3571_v3  ;;  %v1041_v13 = vsel %vm881_vm4, %v1034_v10, %v1036_v40  ;;  %v2558_v26 = vpop.eup %2557  ;;  %v1449_v3 = vmul.f32 %v3723_v22, %v3163_v24 }
 0x2ed   : > { %v775_v39 = vadd.f32 %v767_v21, %v731_v18  ;;  %v3783_v54 = vadd.f32 %v1041_v13, %v3616_v30  ;;  %1429 = vrot.lane.b32.xlu1 %v1414_v29, %s2783_s5  ;;  %1461 = vrot.lane.b32.xlu0 %v1448_v44, %s2786_s3  ;;  %v1040_v30 = vsel %vm881_vm4, %v3686_v1, %v3684_v15  ;;  %v1268_v50 = vmul.f32 0.5, %v2558_v26 }
 0x2ee   : > { %v1048_v40 = vadd.f32 %v1040_v30, %v3602_v9  ;;  %v1452_v15 = vmul.f32 %v3755_v27, %v3186_v32  ;;  %v972_v9 = vmul.f32 2.0, %v3581_v41  ;;  %v1284_v41 = vmul.f32 %v3506_v12, %v3394_v5 }
 0x2ef   : > { %v3787_v19 = vmul.f32 %v963_v34, %v775_v39  ;;  %v1028_v31 = vpop.permute.xlu1 %1027  ;;  %v1068_v57 = vpop.permute.xlu0 %1067  ;;  %v1272_v51 = vadd.f32 0.5, %v1268_v50  ;;  %v974_v44 = vmul.f32 2.0, %v3593_v53  ;;  %v1486_v34 = vmul.f32 %v3723_v22, %v3197_v36 }
 0x2f0   : > { %v1039_v52 = vsel %vm881_vm4, %v1028_v31, %v3686_v1  ;;  %v1447_v1 = vmul.f32 %v3706_v28, %v3163_v24  ;;  %v1485_v24 = vmul.f32 %v3721_v56, %v3197_v36  ;;  %v1285_v53 = vmul.f32 %v3522_v2, %v3439_v38 }
 0x2f1   : > { %v3799_v17 = vadd.f32 %v1039_v52, %v3629_v47  ;;  %1463 = vrot.lane.b32.xlu1 %v1449_v3, %s2786_s3  ;;  %1467 = vrot.lane.b32.xlu0 %v1451_v55, %s2786_s3  ;;  %v1489_v55 = vmul.f32 %v3755_v27, %v3212_v42  ;;  %v1487_v30 = vmul.f32 %v3739_v16, %v3212_v42 }
 0x2f2   : > { %v1051_v16 = vmul.f32 %v3283_v61, %v3303_v49  ;;  %v1360_v49 = vmul.f32 %v3489_v33, %v3283_v61 }
 0x2f3   : > { %v2560_v8 = vpop.eup %2559  ;;  %v3804_v58 = vpop.permute.xlu1 %1065 }
 0x2f4   : > { %v1074_v45 = vpop.permute.xlu0 %1073  ;;  %v1076_v47 = vsel %vm932_vm5, %v3804_v58, %v1068_v57  ;;  %v1270_v43 = vmul.f32 0.5, %v2560_v8  ;;  %v1283_v8 = vmul.f32 %v3489_v33, %v3394_v5  ;;  %v1326_v5 = vmul.f32 %v3520_v4, %v3281_v60 }
 0x2f5   : > { %v1084_v48 = vadd.f32 %v1076_v47, %v1048_v40  ;;  %1469 = vrot.lane.b32.xlu1 %v1452_v15, %s2786_s3  ;;  %1459 = vrot.lane.b32.xlu0 %v1447_v1, %s2786_s3  ;;  %v1054_v15 = vmul.f32 %v3287_v63, %v3332_v35  ;;  %v1361_v35 = vmul.f32 %v3506_v12, %v3283_v61 }
 0x2f6   : > { %v1274_v29 = vadd.f32 0.5, %v1270_v43  ;;  %v1364_v60 = vmul.f32 %v3530_v46, %v3287_v63  ;;  %v1362_v12 = vmul.f32 %v3520_v4, %v3287_v63  ;;  %v1359_v33 = vmul.f32 %v3487_v20, %v3283_v61 }
 0x2f7   : > { %v1276_v23 = vmul.f32 %v1272_v51, %v1084_v48  ;;  %v3815_v0 = vpop.permute.xlu1 %1071 }
 0x2f8   : > { %v1304_v6 = vpop.permute.xlu0 %1303  ;;  %v1078_v18 = vsel %vm932_vm5, %v3815_v0, %v1074_v45  ;;  %v1484_v45 = vmul.f32 %v3706_v28, %v3197_v36  ;;  %v1323_v36 = vmul.f32 %v3487_v20, %v3279_v59  ;;  %v1363_v59 = vmul.f32 %v3522_v2, %v3287_v63  ;;  %v1547_v28 = vld [vmem:[%s4180_s24] sm:$0xff]  ;;  %v1548_v2 = vld [vmem:[%s4180_s24 + $0x8] sm:$0xff] }
 0x2f9   : > { %v3823_v14 = vadd.f32 %v1276_v23, %v972_v9  ;;  %v1086_v10 = vadd.f32 %v1078_v18, %v1050_v11  ;;  %1465 = vrot.lane.b32.xlu1 %v1450_v25, %s2786_s3  ;;  %1498 = vrot.lane.b32.xlu0 %v1485_v24, %s2787_s6  ;;  %v1488_v11 = vmul.f32 %v3741_v7, %v3212_v42  ;;  %v2162_v63 = vld [vmem:[%s4181_s18] sm:$0xff]  ;;  %v2163_v20 = vld [vmem:[%s4181_s18 + $0x8] sm:$0xff] }
 0x2fb   : > { %v1278_v32 = vmul.f32 %v1274_v29, %v1086_v10  ;;  %v1302_v21 = vpop.permute.xlu1 %1301  ;;  %v1261_v29 = vmul.f32 0.5, %v3741_v7 }
 0x2fc   : > { %v3829_v13 = vpop.permute.xlu0 %1309  ;;  %v1312_v39 = vsel %vm881_vm4, %v1302_v21, %v1304_v6 }
 0x2fd   : > { %v3836_v26 = vadd.f32 %v1278_v32, %v974_v44  ;;  %v3838_v31 = vadd.f32 %v1312_v39, %v1284_v41  ;;  %1500 = vrot.lane.b32.xlu1 %v1486_v34, %s2787_s6  ;;  %1504 = vrot.lane.b32.xlu0 %v1488_v11, %s2787_s6  ;;  %v1259_v32 = vmul.f32 0.5, %v3721_v56  ;;  %2561 = vtanh.f32 %v1261_v29  ;;  %v4183_v39 = vld [vmem:[#allocation19_spill] sm:$0xff] }
 0x2ff   : > { %v3840_v57 = vpop.permute.xlu1 %1307  ;;  %2563 = vtanh.f32 %v1259_v32 }
 0x300   : > { %v1306_v3 = vpop.permute.xlu0 %1305 }
 0x301   : > { %v1313_v52 = vsel %vm881_vm4, %v1306_v3, %v3840_v57  ;;  %1506 = vrot.lane.b32.xlu1 %v1489_v55, %s2787_s6  ;;  %1502 = vrot.lane.b32.xlu0 %v1487_v30, %s2787_s6 }
 0x302   : > { %v3850_v50 = vadd.f32 %v1313_v52, %v1285_v53  ;;  %v1402_v53 = vmul.f32 %v3723_v22, %v4183_v39 }
 0x303   : > { %v1300_v40 = vpop.permute.xlu1 %1299 }
 0x304   : > { %v1311_v1 = vsel %vm881_vm4, %v1300_v40, %v1302_v21  ;;  %v3907_v47 = vpop.permute.xlu0 %1339 }
 0x305   : > { %v3859_v42 = vadd.f32 %v1311_v1, %v1283_v8  ;;  %1496 = vrot.lane.b32.xlu1 %v1484_v45, %s2787_s6  ;;  %1069 = vrot.lane.b32.xlu0 %v1054_v15, %s2785_s25  ;;  %v1404_v45 = vmul.f32 %v3755_v27, %v3285_v62  ;;  %v1403_v15 = vmul.f32 %v3741_v7, %v3285_v62 }
 0x306   : > { %v1401_v27 = vmul.f32 %v3721_v56, %v4183_v39 }
 0x307   : > { %v3909_v48 = vpop.permute.xlu1 %1337 }
 0x308   : > { %v3911_v51 = vpop.permute.xlu0 %1345 }
 0x309   : > { %1063 = vrot.lane.b32.xlu1 %v1051_v16, %s2785_s25  ;;  %1341 = vrot.lane.b32.xlu0 %v1326_v5, %s2783_s5  ;;  %s2214_s25 = sshll.u32 %s3104_s0, 4  ;;  %s4016_s25 = int_to_ptr.vmem [resolvable:$true] %s2214_s25 }
 0x30b   : > { %v3913_v43 = vpop.permute.xlu1 %1343 }
 0x30d   : > { %1335 = vrot.lane.b32.xlu1 %v1323_v36, %s2783_s5  ;;  %1375 = vrot.lane.b32.xlu0 %v1361_v35, %s2784_s23  ;;  %s4182_s5 = sld [smem:[#allocation35_spill]] }
 0x311   : > { %1373 = vrot.lane.b32.xlu1 %v1360_v49, %s2784_s23  ;;  %1381 = vrot.lane.b32.xlu0 %v1364_v60, %s2784_s23  ;;  %v2562_v49 = vpop.eup %2561 }
 0x313   : > { %v2178_v61 = vld [vmem:[%s4182_s5] sm:$0xff]  ;;  %v2179_v4 = vld [vmem:[%s4182_s5 + $0x8] sm:$0xff] }
 0x315   : > { %1379 = vrot.lane.b32.xlu1 %v1363_v59, %s2784_s23  ;;  %1377 = vrot.lane.b32.xlu0 %v1362_v12, %s2784_s23 }
 0x319   : > { %1371 = vrot.lane.b32.xlu1 %v1359_v33, %s2784_s23  ;;  %1556 = vperm.xlu0 %2548, %v1548_v2  }
 0x31d   : > { %1551 = vperm.xlu1 %2547, %v1547_v28   ;;  %2182 = vperm.xlu0 %2548, %v2178_v61  }
 0x321   : > { %2166 = vperm.xlu1 %2547, %v2162_v63  }
 0x325   : > { %2171 = vperm.xlu1 %2547, %v2163_v20  }
 0x329   : > { %2187 = vperm.xlu1 %2547, %v2179_v4  }
 0x353   : > { %v1426_v9 = vpop.permute.xlu0 %1425  ;;  %v1428_v23 = vpop.permute.xlu1 %1427 }
 0x354   : > { %v1436_v11 = vsel %vm1189_vm6, %v1426_v9, %v1428_v23  ;;  %v1269_v23 = vmul.f32 0.5, %v2562_v49 }
 0x355   : > { %v1444_v52 = vadd.f32 %v1436_v11, %v1402_v53  ;;  %v973_v53 = vmul.f32 2.0, %v3773_v37  ;;  %v1348_v37 = vsel %vm1189_vm6, %v3909_v48, %v3907_v47  ;;  %v1350_v47 = vsel %vm1189_vm6, %v3913_v43, %v3911_v51 }
 0x356   : > { %v1273_v11 = vadd.f32 0.5, %v1269_v23  ;;  %v1356_v49 = vadd.f32 %v1348_v37, %v3838_v31 }
 0x357   : > { %v1432_v6 = vpop.permute.xlu0 %1431 }
 0x35b   : > { %v1434_v25 = vpop.permute.xlu1 %1433  ;;  %v1424_v24 = vpop.permute.xlu0 %1423 }
 0x35c   : > { %v1438_v8 = vsel %vm1189_vm6, %v1432_v6, %v1434_v25  ;;  %v1435_v33 = vsel %vm1189_vm6, %v1424_v24, %v1426_v9 }
 0x35d   : > { %v1446_v60 = vadd.f32 %v1438_v8, %v1404_v45  ;;  %v1443_v25 = vadd.f32 %v1435_v33, %v1401_v27 }
 0x35f   : > { %v1430_v18 = vpop.permute.xlu1 %1429  ;;  %v1462_v10 = vpop.permute.xlu0 %1461 }
 0x360   : > { %v1437_v40 = vsel %vm1189_vm6, %v1430_v18, %v1432_v6  ;;  %v2564_v6 = vpop.eup %2563 }
 0x361   : > { %v1445_v59 = vadd.f32 %v1437_v40, %v1403_v15 }
 0x363   : > { %v1464_v41 = vpop.permute.xlu1 %1463  ;;  %v1468_v44 = vpop.permute.xlu0 %1467 }
 0x364   : > { %v1473_v30 = vsel %vm1471_vm8, %v1462_v10, %v1464_v41 }
 0x365   : > { %v1481_v1 = vadd.f32 %v1473_v30, %v1444_v52 }
 0x367   : > { %v1470_v21 = vpop.permute.xlu1 %1469  ;;  %v1460_v34 = vpop.permute.xlu0 %1459 }
 0x368   : > { %v1475_v22 = vsel %vm1471_vm8, %v1468_v44, %v1470_v21  ;;  %v1472_v61 = vsel %vm1471_vm8, %v1460_v34, %v1462_v10  ;;  %v1267_v21 = vmul.f32 0.5, %v2564_v6 }
 0x369   : > { %v1483_v28 = vadd.f32 %v1475_v22, %v1446_v60  ;;  %v1480_v24 = vadd.f32 %v1472_v61, %v1443_v25  ;;  %v1545_v22 = vld [vmem:[%s4184_s4] sm:$0xff] }
 0x36a   : > { %v1271_v45 = vadd.f32 0.5, %v1267_v21 }
 0x36b   : > { %v1466_v3 = vpop.permute.xlu1 %1465  ;;  %v1499_v55 = vpop.permute.xlu0 %1498 }
 0x36c   : > { %v1474_v36 = vsel %vm1471_vm8, %v1466_v3, %v1468_v44 }
 0x36d   : > { %v1482_v62 = vadd.f32 %v1474_v36, %v1445_v59 }
 0x36f   : > { %v1501_v16 = vpop.permute.xlu1 %1500  ;;  %v1505_v5 = vpop.permute.xlu0 %1504 }
 0x370   : > { %v1510_v35 = vsel %vm1508_vm9, %v1499_v55, %v1501_v16 }
 0x371   : > { %v1518_v12 = vadd.f32 %v1510_v35, %v1481_v1  ;;  %v971_v1 = vmul.f32 2.0, %v3787_v19  ;;  %v1286_v19 = vmul.f32 %v3530_v46, %v3439_v38  ;;  %v1546_v38 = vld [vmem:[%s4184_s4 + $0x8] sm:$0xff] }
 0x372   : > { %v1563_v23 = vsel %vm1471_vm8, %v1546_v38, 0 }
 0x373   : > { %v1522_v7 = vmul.f32 0.5, %v1518_v12  ;;  %v1507_v2 = vpop.permute.xlu1 %1506  ;;  %v1503_v63 = vpop.permute.xlu0 %1502  ;;  %v1560_v12 = vsel %vm1471_vm8, %v1545_v22, 0 }
 0x374   : > { %v1512_v20 = vsel %vm1508_vm9, %v1505_v5, %v1507_v2  ;;  %v1511_v4 = vsel %vm1508_vm9, %v1503_v63, %v1505_v5 }
 0x375   : > { %2565 = vtanh.f32 %v1522_v7  ;;  %v1520_v18 = vadd.f32 %v1512_v20, %v1483_v28  ;;  %v1519_v9 = vadd.f32 %v1511_v4, %v1482_v62  ;;  %v3967_v7 = vand.u32 4294901760, %v1560_v12 }
 0x377   : > { %v1524_v29 = vmul.f32 0.5, %v1520_v18  ;;  %v1523_v56 = vmul.f32 0.5, %v1519_v9  ;;  %v1497_v41 = vpop.permute.xlu1 %1496  ;;  %v1070_v44 = vpop.permute.xlu0 %1069 }
 0x378   : > { %v1509_v32 = vsel %vm1508_vm9, %v1497_v41, %v1499_v55  ;;  %v1077_v10 = vsel %vm932_vm5, %v1070_v44, %v3815_v0 }
 0x379   : > { %2567 = vtanh.f32 %v1524_v29  ;;  %v1517_v34 = vadd.f32 %v1509_v32, %v1480_v24  ;;  %v1085_v39 = vadd.f32 %v1077_v10, %v3783_v54 }
 0x37a   : > { %2569 = vtanh.f32 %v1523_v56 }
 0x37b   : > { %v1521_v3 = vmul.f32 0.5, %v1517_v34  ;;  %v1277_v30 = vmul.f32 %v1273_v11, %v1085_v39  ;;  %v1064_v52 = vpop.permute.xlu1 %1063  ;;  %v1342_v8 = vpop.permute.xlu0 %1341 }
 0x37c   : > { %v1075_v40 = vsel %vm932_vm5, %v1064_v52, %v3804_v58  ;;  %v1314_v58 = vsel %vm881_vm4, %v3840_v57, %v3829_v13  ;;  %v1349_v13 = vsel %vm1189_vm6, %v1342_v8, %v3913_v43 }
 0x37d   : > { %2571 = vtanh.f32 %v1521_v3  ;;  %v1281_v55 = vadd.f32 %v1277_v30, %v973_v53  ;;  %v1083_v0 = vadd.f32 %v1075_v40, %v3799_v17  ;;  %v1322_v27 = vadd.f32 %v1314_v58, %v1286_v19 }
 0x37e   : > { %v1357_v63 = vadd.f32 %v1349_v13, %v3850_v50  ;;  %v3977_v50 = vsub.f32 %v1560_v12, %v3967_v7 }
 0x37f   : > { %v2566_v15 = vpop.eup %2565  ;;  %v1275_v16 = vmul.f32 %v1271_v45, %v1083_v0  ;;  %v1336_v54 = vpop.permute.xlu1 %1335  ;;  %v1358_v51 = vadd.f32 %v1350_v47, %v1322_v27 }
 0x380   : > { %v1376_v5 = vpop.permute.xlu0 %1375  ;;  %v1530_v36 = vmul.f32 0.5, %v2566_v15  ;;  %v1347_v61 = vsel %vm1189_vm6, %v1336_v54, %v3909_v48  ;;  %v3979_v48 = vand.u32 4294901760, %v1563_v23  ;;  %v1636_v52 = vand.u32 4294901760, %v3977_v50 }
 0x381   : > { %v1279_v17 = vadd.f32 %v1275_v16, %v971_v1  ;;  %v1355_v44 = vadd.f32 %v1347_v61, %v3859_v42 }
 0x382   : > { %v1534_v62 = vadd.f32 0.5, %v1530_v36  ;;  %v3986_v8 = vsub.f32 %v1563_v23, %v3979_v48 }
 0x383   : > { %v2568_v35 = vpop.eup %2567  ;;  %v1374_v60 = vpop.permute.xlu1 %1373 }
 0x384   : > { %v1382_v59 = vpop.permute.xlu0 %1381  ;;  %v2570_v33 = vpop.eup %2569  ;;  %v1532_v28 = vmul.f32 0.5, %v2568_v35  ;;  %v1384_v57 = vsel %vm1240_vm7, %v1374_v60, %v1376_v5  ;;  %v1637_v5 = vsub.f32 %v3977_v50, %v1636_v52 }
 0x385   : > { %v1531_v46 = vmul.f32 0.5, %v2570_v33  ;;  %v1392_v31 = vadd.f32 %v1384_v57, %v1356_v49 }
 0x386   : > { %v1536_v18 = vadd.f32 0.5, %v1532_v28 }
 0x387   : > { %v2572_v2 = vpop.eup %2571  ;;  %v1538_v20 = vmul.f32 %v1534_v62, %v1392_v31  ;;  %v1380_v43 = vpop.permute.xlu1 %1379  ;;  %v1535_v56 = vadd.f32 0.5, %v1531_v46 }
 0x388   : > { %v1378_v4 = vpop.permute.xlu0 %1377  ;;  %v1529_v6 = vmul.f32 0.5, %v2572_v2  ;;  %v1386_v25 = vsel %vm1240_vm7, %v1380_v43, %v1382_v59 }
 0x389   : > { %v1385_v9 = vsel %vm1240_vm7, %v1378_v4, %v1380_v43  ;;  %v1542_v24 = vadd.f32 %v1538_v20, %v3823_v14  ;;  %v1394_v29 = vadd.f32 %v1386_v25, %v1358_v51  ;;  %v4185_v51 = vmov 0.0  }
 0x38a   : > { %v1393_v41 = vadd.f32 %v1385_v9, %v1357_v63  ;;  %v1533_v39 = vadd.f32 0.5, %v1529_v6 }
 0x38b   : > { %v1540_v32 = vmul.f32 %v1536_v18, %v1394_v29  ;;  %v1372_v21 = vpop.permute.xlu1 %1371  ;;  %v1565_v34 = vand.u32 4294901760, %v1542_v24 }
 0x38c   : > { %v1539_v10 = vmul.f32 %v1535_v56, %v1393_v41  ;;  %v1383_v11 = vsel %vm1240_vm7, %v1372_v21, %v1374_v60  ;;  %v1638_v60 = vand.u32 4294901760, %v1637_v5  ;;  %v2108_v21 = vld [vmem:[%s3091_s26 + $0x18] sm:$0xff] }
 0x38d   : > { %v1544_v53 = vadd.f32 %v1540_v32, %v3836_v26  ;;  %v1391_v3 = vadd.f32 %v1383_v11, %v1355_v44  ;;  %v1657_v30 = vsub.f32 %v1542_v24, %v1565_v34  ;;  %v1647_v26 = vand.u32 4294901760, %v3986_v8  ;;  %v2106_v32 = vld [vmem:[%s3091_s26 + $0x8] sm:$0xff] }
 0x38e   : > { %v1543_v14 = vadd.f32 %v1539_v10, %v1281_v55 }
 0x38f   : > { %v1537_v40 = vmul.f32 %v1533_v39, %v1391_v3  ;;  %v1569_v45 = vand.u32 4294901760, %v1544_v53  ;;  %v1658_v0 = vand.u32 4294901760, %v1657_v30  ;;  %v1648_v59 = vsub.f32 %v3986_v8, %v1647_v26 }
 0x390   : > { %v1571_v42 = vand.u32 4294901760, %v1543_v14 }
 0x391   : > { %v1541_v15 = vadd.f32 %v1537_v40, %v1279_v17  ;;  %v2358_v1 = vpack.c.bf16 %v1569_v45, %v1565_v34  ;;  %v1669_v16 = vsub.f32 %v1544_v53, %v1569_v45  ;;  %v1659_v37 = vsub.f32 %v1657_v30, %v1658_v0 }
 0x392   : > { %v1675_v54 = vsub.f32 %v1543_v14, %v1571_v42  ;;  %v1649_v46 = vand.u32 4294901760, %v1648_v59 }
 0x393   : > { %2359 = vmatprep.subr.bf16.mxu1 %v2358_v1  ;;  %2371 = vmatprep.subr.bf16.mxu0 %v2358_v1  ;;  %v1567_v55 = vand.u32 4294901760, %v1541_v15  ;;  %v1670_v22 = vand.u32 4294901760, %v1669_v16  ;;  %v2366_v36 = vpack.c.bf16 %v1669_v16, %v1657_v30  ;;  %v1660_v17 = vand.u32 4294901760, %v1659_v37 }
 0x394   : > { %v1676_v58 = vand.u32 4294901760, %v1675_v54 }
 0x395   : > { %v2360_v19 = vpack.c.bf16 %v1571_v42, %v1567_v55  ;;  %v1663_v35 = vsub.f32 %v1541_v15, %v1567_v55  ;;  %v2374_v49 = vpack.c.bf16 %v1670_v22, %v1658_v0  ;;  %v1671_v47 = vsub.f32 %v1669_v16, %v1670_v22 }
 0x396   : > { %v1677_v27 = vsub.f32 %v1675_v54, %v1676_v58 }
 0x397   : > { %2361 = vmatpush1.bf16.msra.mxu1 %v2360_v19  ;;  %2373 = vmatpush1.bf16.msra.mxu0 %v2360_v19  ;;  %v1672_v12 = vand.u32 4294901760, %v1671_v47  ;;  %v1664_v33 = vand.u32 4294901760, %v1663_v35  ;;  %v2368_v28 = vpack.c.bf16 %v1675_v54, %v1663_v35 }
 0x398   : > { %2375 = vmatprep.subr.bf16.mxu0 %v2374_v49  ;;  %v1678_v62 = vand.u32 4294901760, %v1677_v27  ;;  %v1557_v25 = vpop.permute.xlu0 %1556 }
 0x399   : > { %v2362_v13 = vpack.c.bf16 %v1672_v12, %v1660_v17  ;;  %v2376_v57 = vpack.c.bf16 %v1676_v58, %v1664_v33  ;;  %v1665_v38 = vsub.f32 %v1663_v35, %v1664_v33 }
 0x39a   : > { %1639 = vmatmul.mubr.f32.vlgmr.msra.gmra.mrb[0].mxu1 %v1638_v60  ;;  %1916 = vmatmul.mubr.f32.vlgmr.msra.gmra.mrb[0].mxu0 %v1636_v52 }
 0x39b   : > { %2363 = vmatprep.subr.bf16.mxu1 %v2362_v13  ;;  %2377 = vmatpush1.bf16.msra.mxu0 %v2376_v57  ;;  %v1666_v31 = vand.u32 4294901760, %v1665_v38 }
 0x39c   : > { %2379 = vmatprep.subr.bf16.mxu0 %v2358_v1  ;;  %1644 = vmatprep.mubr.f32.mxu1 %v4185_v51  ;;  %v1552_v63 = vpop.permute.xlu1 %1551 }
 0x39d   : > { %1921 = vmatprep.mubr.f32.mxu0 %v4185_v51  ;;  %v2364_v2 = vpack.c.bf16 %v1678_v62, %v1666_v31 }
 0x39e   : > { %1650 = vmatmul.mubr.f32.gmra.mrb[2].mxu1 %v1649_v46  ;;  %1925 = vmatmul.mubr.f32.gmra.mrb[2].mxu0 %v1647_v26 }
 0x39f   : > { %2365 = vmatpush1.bf16.msra.mxu1 %v2364_v2  ;;  %1740 = vmatprep.mubr.f32.mxu1 %v4185_v51 }
 0x3a0   : > { %2367 = vmatprep.subr.bf16.mxu1 %v2366_v36  ;;  %2007 = vmatprep.mubr.f32.mxu0 %v4185_v51 }
 0x3a2   : > { %1742 = vmatmul.mubr.f32.vlgmr.msra.gmra.mrb[0].mxu1 %v3967_v7  ;;  %2009 = vmatmul.mubr.f32.vlgmr.msra.gmra.mrb[0].mxu0 %v3967_v7 }
 0x3a3   : > { %2381 = vmatpush1.bf16.msra.mxu0 %v2360_v19  ;;  %2369 = vmatpush1.bf16.msra.mxu1 %v2368_v28 }
 0x3a4   : > { %1747 = vmatprep.mubr.f32.mxu1 %v4185_v51  ;;  %2014 = vmatprep.mubr.f32.mxu0 %v4185_v51 }
 0x3a6   : > { %1749 = vmatmul.mubr.f32.gmra.mrb[2].mxu1 %v3979_v48  ;;  %2016 = vmatmul.mubr.f32.gmra.mrb[2].mxu0 %v3979_v48 }
 0x3a7   : > { %1827 = vmatprep.mubr.f32.mxu1 %v4185_v51  ;;  %2090 = vmatprep.mubr.f32.mxu0 %v4185_v51 }
 0x3aa   : > { %1830 = vmatmul.mubr.f32.vlgmr.msra.gmra.mrb[0].mxu1 %v3977_v50  ;;  %2092 = vmatmul.mubr.f32.vlgmr.msra.gmra.mrb[0].mxu0 %v3967_v7  ;;  %v2105_v50 = vld [vmem:[%s3091_s26] sm:$0xff] }
 0x3ab   : > { %1835 = vmatprep.mubr.f32.mxu1 %v4185_v51  ;;  %2097 = vmatprep.mubr.f32.mxu0 %v4185_v51 }
 0x3ae   : > { %1838 = vmatmul.mubr.f32.gmra.mrb[2].mxu1 %v3986_v8  ;;  %2099 = vmatmul.mubr.f32.gmra.mrb[2].mxu0 %v3979_v48  ;;  %v2107_v48 = vld [vmem:[%s3091_s26 + $0x10] sm:$0xff]  ;;  %s4186_s26 = sld [smem:[#allocation13_spill]] }
 0x3b4   : > { %s2354_s22 = sshll.u32 %s4186_s26, 3  ;;  %s2638_s26 = scalar_lea.vmem %s4016_s25, 512 }
 0x3b5   : > { %s2211_s23 = sadd.s32 %s2354_s22, %s2353_s19  ;;  %p2639_p13 = scmp.ne.s32.totalorder %s4016_s25, %s2638_s26 }
 0x3b6   : > { %s2355_s6 = sshll.u32 %s2211_s23, 7  ;;  %s2788_s19 = smov [#allocation8]  }
 0x3b7   : > { %s4021_s27 = scalar_lea.hbm %s4187_s12, %s2355_s6  ;;  %p2640_p11 = pnand %p2639_p13, %p4189_p6 }
 0x3b8   : > { %s2642_s22 = sshll.u32 %s2788_s19, 4  ;;  %s2643_s22 = int_to_ptr.vmem [resolvable:$false] %s2642_s22 }
 0x3b9   : > { %p2641_p2 = pneg %p2640_p11  ;;  %s2644_s23 = scalar_lea.vmem %s2643_s22, 1024 }
 0x3ba   : > { %p2645_p5 = scmp.lt.s32.totalorder %s4016_s25, %s2643_s22  ;;  %p2646_p8 = scmp.lt.s32.totalorder %s2644_s23, %s2638_s26 }
 0x3bc   : > { %p2647_p0 = por %p2646_p8, %p2645_p5 }
 0x3be   : > { %p2648_p4 = pnand %p2647_p0, %p2641_p2 }
 0x47d   : > { %v1831_v61 = vpop.f32.mrb[0].mxu1  ;;  %v2093_v20 = vpop.f32.mrb[0].mxu0 }
 0x47e   : > { %v2382_v43 = vadd.f32 %v1831_v61, %v1552_v63  ;;  %v1833_v4 = vpop.f32.mrb[1].mxu1  ;;  %v2095_v23 = vpop.f32.mrb[1].mxu0 }
 0x47f   : > { %v2384_v6 = vadd.f32 %v1833_v4, %v1552_v63  ;;  %v2167_v4 = vpop.permute.xlu1 %2166 }
 0x480   : > { %v2383_v7 = vadd.f32 %v2382_v43, %v2093_v20 }
 0x481   : > { %v2385_v18 = vadd.f32 %v2384_v6, %v2095_v23  ;;  %v1839_v9 = vpop.f32.mrb[2].mxu1  ;;  %v2100_v24 = vpop.f32.mrb[2].mxu0 }
 0x482   : > { %v2386_v29 = vadd.f32 %v1839_v9, %v1557_v25  ;;  %v1841_v56 = vpop.f32.mrb[3].mxu1  ;;  %v2102_v41 = vpop.f32.mrb[3].mxu0  ;;  %v2109_v11 = vadd.f32 %v2383_v7, %v2105_v50 }
 0x483   : > { %v2388_v44 = vadd.f32 %v1841_v56, %v1557_v25  ;;  %v2110_v53 = vadd.f32 %v2385_v18, %v2106_v32  ;;  %v2172_v23 = vpop.permute.xlu1 %2171 }
 0x484   : > { %v2387_v10 = vadd.f32 %v2386_v29, %v2100_v24 }
 0x485   : > { %v2389_v34 = vadd.f32 %v2388_v44, %v2102_v41  ;;  %v2183_v44 = vpop.permute.xlu0 %2182 }
 0x486   : > { %v2111_v39 = vadd.f32 %v2387_v10, %v2107_v48 }
 0x487   : > { %v2112_v14 = vadd.f32 %v2389_v34, %v2108_v21  ;;  %v2188_v50 = vpop.permute.xlu1 %2187 }
 0x488   : > { %v2113_v3 = vadd.f32 %v2111_v39, %v2109_v11 }
 0x489   : > { %v2120_v30 = vadd.f32 %v2112_v14, %v2110_v53 }
 0x48a   : > { %v2114_v52 = vrot.slane %v2113_v3, 4 }
 0x48b   : > { %v2121_v8 = vrot.slane %v2120_v30, 4 }
 0x48c   : > { %v2115_v40 = vadd.f32 %v2114_v52, %v2113_v3 }
 0x48d   : > { %v2122_v45 = vadd.f32 %v2121_v8, %v2120_v30 }
 0x48e   : > { %v2116_v42 = vrot.slane %v2115_v40, 2 }
 0x48f   : > { %v2123_v0 = vrot.slane %v2122_v45, 2 }
 0x490   : > { %v2117_v15 = vadd.f32 %v2116_v42, %v2115_v40 }
 0x491   : > { %v2124_v1 = vadd.f32 %v2123_v0, %v2122_v45 }
 0x492   : > { %v2118_v16 = vrot.slane %v2117_v15, 1 }
 0x493   : > { %v2125_v54 = vrot.slane %v2124_v1, 1 }
 0x494   : > { %v2119_v5 = vadd.f32 %v2118_v16, %v2117_v15 }
 0x495   : > { %v2126_v37 = vadd.f32 %v2125_v54, %v2124_v1 }
 0x496   : > { %v2128_v26 = vmul.f32 0.0625, %v2119_v5 }
 0x497   : > { %v2129_v55 = vmul.f32 0.0625, %v2126_v37 }
 0x498   : > { %v2130_v22 = vsub.f32 %v2109_v11, %v2128_v26  ;;  %v2132_v58 = vsub.f32 %v2111_v39, %v2128_v26 }
 0x499   : > { %v2131_v36 = vsub.f32 %v2110_v53, %v2129_v55  ;;  %v2133_v19 = vsub.f32 %v2112_v14, %v2129_v55 }
 0x49a   : > { %v2134_v35 = vmul.f32 %v2130_v22, %v2130_v22  ;;  %v2136_v49 = vmul.f32 %v2132_v58, %v2132_v58 }
 0x49b   : > { %v2135_v47 = vmul.f32 %v2131_v36, %v2131_v36  ;;  %v2137_v60 = vmul.f32 %v2133_v19, %v2133_v19 }
 0x49c   : > { %v2138_v17 = vadd.f32 %v2136_v49, %v2134_v35 }
 0x49d   : > { %v2145_v59 = vadd.f32 %v2137_v60, %v2135_v47 }
 0x49e   : > { %v2139_v12 = vrot.slane %v2138_v17, 4 }
 0x49f   : > { %v2146_v33 = vrot.slane %v2145_v59, 4 }
 0x4a0   : > { %v2140_v27 = vadd.f32 %v2139_v12, %v2138_v17 }
 0x4a1   : > { %v2147_v28 = vadd.f32 %v2146_v33, %v2145_v59 }
 0x4a2   : > { %v2141_v13 = vrot.slane %v2140_v27, 2 }
 0x4a3   : > { %v2148_v57 = vrot.slane %v2147_v28, 2 }
 0x4a4   : > { %v2142_v38 = vadd.f32 %v2141_v13, %v2140_v27 }
 0x4a5   : > { %v2149_v46 = vadd.f32 %v2148_v57, %v2147_v28 }
 0x4a6   : > { %v2143_v31 = vrot.slane %v2142_v38, 1 }
 0x4a7   : > { %v2150_v62 = vrot.slane %v2149_v46, 1 }
 0x4a8   : > { %v2144_v51 = vadd.f32 %v2143_v31, %v2142_v38 }
 0x4a9   : > { %v2151_v2 = vadd.f32 %v2150_v62, %v2149_v46 }
 0x4aa   : > { %v2152_v63 = vmul.f32 0.0625, %v2144_v51 }
 0x4ab   : > { %v2153_v61 = vmul.f32 0.0625, %v2151_v2 }
 0x4ac   : > { %v2154_v20 = vadd.f32 1e-05, %v2152_v63 }
 0x4ad   : > { %v2155_v43 = vadd.f32 1e-05, %v2153_v61 }
 0x4ae   : > { %2573 = vrsqrt.f32 %v2154_v20 }
 0x4af   : > { %2575 = vrsqrt.f32 %v2155_v43 }
 0x4b8   : > { %v2574_v6 = vpop.eup %2573 }
 0x4b9   : > { %v2576_v7 = vpop.eup %2575  ;;  %v2160_v25 = vmul.f32 %v2574_v6, %v2132_v58  ;;  %v2158_v18 = vmul.f32 %v2574_v6, %v2130_v22 }
 0x4ba   : > { %v2161_v9 = vmul.f32 %v2576_v7, %v2133_v19  ;;  %v2159_v24 = vmul.f32 %v2576_v7, %v2131_v36 }
 0x4bb   : > { %v2176_v29 = vmul.f32 %v2172_v23, %v2160_v25  ;;  %v2174_v56 = vmul.f32 %v2167_v4, %v2158_v18 }
 0x4bc   : > { %v2177_v41 = vmul.f32 %v2172_v23, %v2161_v9  ;;  %v2175_v48 = vmul.f32 %v2167_v4, %v2159_v24 }
 0x4bd   : > { %v2192_v32 = vadd.f32 %v2188_v50, %v2176_v29  ;;  %v2190_v10 = vadd.f32 %v2183_v44, %v2174_v56 }
 0x4be   : > { %v2193_v21 = vadd.f32 %v2188_v50, %v2177_v41  ;;  %v2191_v34 = vadd.f32 %v2183_v44, %v2175_v48 }
 0x4bf   : > { %2196 = vst [vmem:[%s3104_s0 + $0x10] sm:$0xff] %v2192_v32  ;;  %2194 = vst [vmem:[%s3104_s0] sm:$0xff] %v2190_v10 }
 0x4c0   : > { %2197 = vst [vmem:[%s3104_s0 + $0x18] sm:$0xff] %v2193_v21  ;;  %2195 = vst [vmem:[%s3104_s0 + $0x8] sm:$0xff] %v2191_v34 }
 0x4c1   : > { %2651 = shalt.err (!%p2648_p4)
}
 0x4c2   : > { %s2652_s0 = scalar_lea.hbm %s4021_s27, 512  ;;  %s2656_s30 = scalar_lea.hbm %s4188_s17, 2048 }
 0x4c3   : > { %p2653_p10 = scmp.ne.s32.totalorder %s4021_s27, %s2652_s0  ;;  %p2657_p9 = scmp.lt.u32.totalorder %s4021_s27, %s4188_s17 }
 0x4c4   : > { %p2658_p7 = scmp.lt.u32.totalorder %s2656_s30, %s2652_s0  ;;  %p2660_p13 = scmp.lt.u32.totalorder %s2652_s0, %s4021_s27 }
 0x4c5   : > { %p2654_p1 = pnand %p2653_p10, %p4189_p6 }
 0x4c6   : > { %p2659_p12 = por %p2658_p7, %p2657_p9 }
 0x4c7   : > { %p2655_p3 = pneg %p2654_p1 }
 0x4c8   : > { %p2661_p11 = por %p2660_p13, %p2659_p12 }
 0x4ca   : > { %p2662_p2 = pnand %p2661_p11, %p2655_p3 }
 0x4cc   : > { %2665 = shalt.err (!%p2662_p2)
}
 0x4cd   : > { %s2789_s26 = smov 256   ;;  %s2790_s22 = smov 512  }
 0x4ce   : > { %2410 = dma.vmem_to_hbm [thread:$0]  (%p4189_p6), %s4016_s25, 512, %s4021_s27, %s2199_s13, %s2789_s26, %s2790_s22, %s2786_s3  }
 0x4cf PF: > { %s4190_s23 = sld [smem:[#allocation12_spill]]  ;;  %p2424_p5 = scmp.ge.s32.totalorder %s2764_s15, 2 }
 0x4d0   : > { %p4191_p8 = scmp.ne.s32.totalorder %s4138_s21, 0 }
 0x4d2   : > { %p2420_p0 = pnand %p2424_p5, %p4191_p8 }
 0x4d5   : > { %s2229_s6 = sand.u32 1, %s4190_s23  }
 0x4d6   : > { %s2230_s0 = scalar_lea.sflag [#allocation5], %s2229_s6 }
 0x4d7   : > { %2719 = dma.done.wait (!%p2420_p0), %s2230_s0, 512  }
 0x4d8   : > { %2721 = vsyncadd (!%p2420_p0), %s2230_s0, 4294966784  ;;  %s27_s15 = sadd.s32 1, %s2764_s15   ;;  %s4192_s20 = sld [smem:[#allocation17_spill]] }
 0x4d9   : > { %p24_p4 = scmp.ge.s32.totalorder %s27_s15, 6   ;;  %s4193_s11 = sld [smem:[#allocation14_spill]] }
 0x4da   : > { %s4194_s13 = sld [smem:[#allocation15_spill]]  ;;  %s4195_s8 = sld [smem:[#allocation16_spill]] }
 0x4db   : > { %s4196_s27 = smov %s2728_s28  ;;  %s4197_s28 = smov %s2732_s29 }
 0x4dc   : > { %s4198_s29 = smov %s3036_s16  ;;  %s4199_s30 = smov %s2740_s9 }
 0x4dd   : > { %s4200_s9 = smov %s2744_s10  ;;  %s4202_s12 = smov %s2760_s14 }
 0x4de   : > { %s4201_s10 = smov %s4192_s20  ;;  %26 = sbr.rel (!%p24_p4) target bundleno = 20 (0x14), region = 118 }
 0x4e0   : > { %s4203_s14 = smov %s4195_s8 }
 0x4e5   :  { %2235 = vsyncpa [#allocation4], 1 }
 0x4e6   :  { %2237 = vsyncpa [#allocation4 + $0x1], 1 }
 0x4e7   :  { %2238 = vsyncpa [#allocation7], 1 }
 0x4e8   :  { %2240 = vsyncpa [#allocation7 + $0x1], 1 }
 0x4e9   :  { %2241 = vsyncpa [#allocation5], 1 }
 0x4ea   :  { %2243 = vsyncpa [#allocation5 + $0x1], 1 }

</bundles_post_ra>
